<compile_context>
chip_gen: v7x
topology: tpu7x:2x2x1
jax: 0.10.0
libtpu: 0.0.40
codegen_flags: <defaults>
</compile_context>

<pallas_src>
import jax
import jax.numpy as jnp
from jax import lax
from jax.experimental import pallas as pl
from jax.experimental.pallas import tpu as pltpu

# ---- model hyper-parameters (small, consistent with a BERT-like forward) ----
VOCAB = 32
BATCH = 2
SEQ = 8
HIDDEN = 32
N_HEADS = 4
HEAD_DIM = HIDDEN // N_HEADS
INTERMEDIATE = 64
N_LAYERS = 2
N_CLASSES = 3
LANE = 128                    # lane-dense padded width for the classifier output
LN_EPS = 1e-12
SMALL_W = 2 * LANE            # packed small-vector row width (256 lanes)


# ----------------------------- kernel helpers --------------------------------
def _layernorm(x, gamma, beta):
    mu = jnp.mean(x, axis=-1, keepdims=True)
    var = jnp.mean((x - mu) ** 2, axis=-1, keepdims=True)
    return (x - mu) * lax.rsqrt(var + LN_EPS) * gamma + beta


# ------------------------------ fused kernel ----------------------------------
# small-pack row layout (width 256):
#   row 0            : emb_ln_g [0:H] | emb_ln_b [H:2H] | pool_b [2H:3H] | out_b_pad [LANE:2*LANE]
#   row 1+2l (l=0,1) : b_big [0:6H] (= bq|bk|b_vo) | bo [6H:7H]
#   row 2+2l         : attn_ln_g [0:H] | attn_ln_b [H:2H] | b1 [2H:2H+I] | b2 [2H+I:3H+I]
#                      | ffn_ln_g [3H+I:4H+I] | ffn_ln_b [4H+I:5H+I]
def bert_fused_kernel(x_ref, bias_ref, wbig_ref, wffn_ref, whead_ref, sm_ref, logits_ref):
    H, HD, NH, I = HIDDEN, HEAD_DIM, N_HEADS, INTERMEDIATE

    bias = bias_ref[...]                                   # (B*S, B*S) block-diag + key-pad bias
    x = _layernorm(x_ref[...], sm_ref[0:1, 0:H], sm_ref[0:1, H:2 * H])      # (B*S, H)

    scale = 1.0 / (HD ** 0.5)
    dn_qkT = (((1,), (1,)), ((), ()))                      # contract last axes: q @ k^T w/o .T

    for li in range(N_LAYERS):                             # static unroll over layers
        rb = 1 + 2 * li                                    # small-pack row: projection biases
        rv = 2 + 2 * li                                    # small-pack row: LN / FFN biases

        # ---- fused [Q | K | V·Wo(per head)] projection: (B*S, H) @ (H, 6H) -> (B*S, 192) ----
        proj = (jnp.dot(x, wbig_ref[li], preferred_element_type=jnp.float32)
                + sm_ref[rb:rb + 1, 0:6 * H])

        attn_out = sm_ref[rb:rb + 1, 6 * H:7 * H]          # bo; broadcasts on first accumulate
        for h in range(NH):                                # static; head math stays 2-D in vregs
            lo = h * HD
            qh = proj[:, lo:lo + HD]
            kh = proj[:, H + lo:H + lo + HD]
            voh = proj[:, 2 * H + h * H:2 * H + (h + 1) * H]          # (B*S, H) value·Wo slab
            s = lax.dot_general(qh, kh, dimension_numbers=dn_qkT,
                                preferred_element_type=jnp.float32) * scale + bias
            s = s - jnp.max(s, axis=-1, keepdims=True)
            p = jnp.exp(s)
            p = p * pl.reciprocal(jnp.sum(p, axis=-1, keepdims=True), approx=True)
            # (p_h @ (x @ Wv_h + bv_h) @ Wo_h) pre-folded: just p_h @ V'_h
            attn_out = attn_out + jnp.dot(p, voh, preferred_element_type=jnp.float32)
        x = _layernorm(x + attn_out, sm_ref[rv:rv + 1, 0:H], sm_ref[rv:rv + 1, H:2 * H])

        # ---- feed-forward ----
        wf = wffn_ref[li]                                  # (H+I, I): rows [0:H]=W1, [H:H+I]=W2
        hdn = (jnp.dot(x, wf[0:H, :], preferred_element_type=jnp.float32)
               + sm_ref[rv:rv + 1, 2 * H:2 * H + I])
        # TODO(synk): HF BERT uses exact erf-GELU; tanh approximation used here.
        hdn = jax.nn.gelu(hdn, approximate=True)
        y = (jnp.dot(hdn, wf[H:H + I, 0:H], preferred_element_type=jnp.float32)
             + sm_ref[rv:rv + 1, 2 * H + I:3 * H + I])
        x = _layernorm(x + y, sm_ref[rv:rv + 1, 3 * H + I:4 * H + I],
                       sm_ref[rv:rv + 1, 4 * H + I:5 * H + I])

    # ---- pooler (tanh over the B CLS rows only) + lane-dense padded classifier head ----
    cls = jnp.concatenate([x[b * SEQ:b * SEQ + 1, :] for b in range(BATCH)], axis=0)   # (B, H)
    pooled = jnp.tanh(jnp.dot(cls, whead_ref[:, LANE:LANE + H],
                              preferred_element_type=jnp.float32) + sm_ref[0:1, 2 * H:3 * H])
    logits_ref[...] = (jnp.dot(pooled, whead_ref[:, 0:LANE],
                               preferred_element_type=jnp.float32)
                       + sm_ref[0:1, LANE:2 * LANE])       # (B, 128) lane-dense store


# --------------------------- wrapper-side packing -----------------------------
def _pack_params(params):
    """Fold Wv_h @ Wo_h per head and pack weights/biases into 4 kernel arrays."""
    L, H, NH, HD, I = N_LAYERS, HIDDEN, N_HEADS, HEAD_DIM, INTERMEDIATE

    wq, wk, wv, wo = params["wq"], params["wk"], params["wv"], params["wo"]
    bq, bk, bv, bo = params["bq"], params["bk"], params["bv"], params["bo"]

    # W_vo[l, :, h*H:(h+1)*H] = Wv_h @ Wo_h ; b_vo analogously (folded value/output projection)
    w_vo = jnp.einsum("lahd,lhdb->lahb",
                      wv.reshape(L, H, NH, HD),
                      wo.reshape(L, NH, HD, H)).reshape(L, H, NH * H)
    b_vo = jnp.einsum("lhd,lhdb->lhb",
                      bv.reshape(L, NH, HD),
                      wo.reshape(L, NH, HD, H)).reshape(L, 1, NH * H)

    w_big = jnp.concatenate([wq, wk, w_vo], axis=-1)       # (L, H, 6H) = (2, 32, 192)
    b_big = jnp.concatenate([bq, bk, b_vo], axis=-1)       # (L, 1, 6H)

    # FFN weights packed: rows [0:H] = W1 (H, I); rows [H:H+I], cols [0:H] = W2 (I, H)
    w_ffn = jnp.zeros((L, H + I, I), jnp.float32)
    w_ffn = w_ffn.at[:, :H, :].set(params["w1"])
    w_ffn = w_ffn.at[:, H:, :H].set(params["w2"])

    # head weights packed: cols [0:LANE] = zero-padded classifier, cols [LANE:LANE+H] = pooler
    w_head = jnp.zeros((H, LANE + H), jnp.float32)
    w_head = w_head.at[:, :N_CLASSES].set(params["out_w"])
    w_head = w_head.at[:, LANE:].set(params["pool_w"])

    # all small vectors packed into one (1 + 2L, 256) array (layout documented on the kernel)
    sm = jnp.zeros((1 + 2 * L, SMALL_W), jnp.float32)
    sm = sm.at[0, 0:H].set(params["emb_ln_g"][0])
    sm = sm.at[0, H:2 * H].set(params["emb_ln_b"][0])
    sm = sm.at[0, 2 * H:3 * H].set(params["pool_b"][0])
    sm = sm.at[0, LANE:LANE + N_CLASSES].set(params["out_b"][0])
    for l in range(L):
        rb, rv = 1 + 2 * l, 2 + 2 * l
        sm = sm.at[rb, 0:6 * H].set(b_big[l, 0])
        sm = sm.at[rb, 6 * H:7 * H].set(bo[l, 0])
        sm = sm.at[rv, 0:H].set(params["attn_ln_g"][l, 0])
        sm = sm.at[rv, H:2 * H].set(params["attn_ln_b"][l, 0])
        sm = sm.at[rv, 2 * H:2 * H + I].set(params["b1"][l, 0])
        sm = sm.at[rv, 2 * H + I:3 * H + I].set(params["b2"][l, 0])
        sm = sm.at[rv, 3 * H + I:4 * H + I].set(params["ffn_ln_g"][l, 0])
        sm = sm.at[rv, 4 * H + I:5 * H + I].set(params["ffn_ln_b"][l, 0])
    return w_big, w_ffn, w_head, sm


# ------------------------------ pallas wrapper --------------------------------
@jax.jit
def sentiment_classifier_forward(params, input_ids, attention_mask):
    B, S = input_ids.shape
    BS = B * S

    # ---- embeddings (gather stays in XLA glue; everything from the embedding LN on is in-kernel)
    # TODO(synk): token_type_ids are not part of the original forward signature; type-0 row used.
    x = (jnp.take(params["word_emb"], input_ids, axis=0)
         + params["pos_emb"][None, :, :]
         + params["tok_emb"][0][None, None, :]).reshape(BS, HIDDEN)

    # block-diagonal additive attention bias over the flattened (B*S) token axis:
    # -1e4 for cross-sequence pairs and for padded keys (HF convention), 0 otherwise.
    seq_id = jnp.repeat(jnp.arange(B), S)
    same_seq = (seq_id[:, None] == seq_id[None, :]).astype(jnp.float32)
    key_keep = attention_mask.astype(jnp.float32).reshape(1, BS)
    bias = (1.0 - same_seq * key_keep) * -1e4                              # (BS, BS)

    w_big, w_ffn, w_head, sm = _pack_params(params)

    def _full(a):
        nd = a.ndim
        return pl.BlockSpec(a.shape, lambda i, _nd=nd: (0,) * _nd)

    logits_pad = pl.pallas_call(
        bert_fused_kernel,
        out_shape=jax.ShapeDtypeStruct((B, LANE), jnp.float32),
        grid=(1,),                                  # single step: whole batch in one invocation
        in_specs=[_full(x), _full(bias), _full(w_big), _full(w_ffn), _full(w_head), _full(sm)],
        out_specs=pl.BlockSpec((B, LANE), lambda i: (0, 0)),
        compiler_params=pltpu.CompilerParams(dimension_semantics=("arbitrary",)),
    )(x, bias, w_big, w_ffn, w_head, sm)

    return logits_pad[:, :N_CLASSES]


# ---------------------- pure-JAX reference (for self-check) -------------------
def _reference_forward(params, input_ids, attention_mask):
    def ln(v, g, b):
        mu = v.mean(-1, keepdims=True)
        var = ((v - mu) ** 2).mean(-1, keepdims=True)
        return (v - mu) / jnp.sqrt(var + LN_EPS) * g + b

    x = (jnp.take(params["word_emb"], input_ids, axis=0)
         + params["pos_emb"][None] + params["tok_emb"][0][None, None])     # (B, S, H)
    x = ln(x, params["emb_ln_g"][0], params["emb_ln_b"][0])
    bias = (1.0 - attention_mask.astype(jnp.float32))[:, None, None, :] * -1e4

    def split(t):
        return t.reshape(BATCH, SEQ, N_HEADS, HEAD_DIM).transpose(0, 2, 1, 3)

    for l in range(N_LAYERS):
        q = x @ params["wq"][l] + params["bq"][l]
        k = x @ params["wk"][l] + params["bk"][l]
        v = x @ params["wv"][l] + params["bv"][l]
        s = jnp.einsum("bhqd,bhkd->bhqk", split(q), split(k)) / (HEAD_DIM ** 0.5) + bias
        p = jax.nn.softmax(s, axis=-1)
        ctx = jnp.einsum("bhqk,bhkd->bhqd", p, split(v)).transpose(0, 2, 1, 3)
        ctx = ctx.reshape(BATCH, SEQ, HIDDEN)
        attn = ctx @ params["wo"][l] + params["bo"][l]
        x = ln(x + attn, params["attn_ln_g"][l], params["attn_ln_b"][l])
        h = jax.nn.gelu(x @ params["w1"][l] + params["b1"][l], approximate=True)
        y = h @ params["w2"][l] + params["b2"][l]
        x = ln(x + y, params["ffn_ln_g"][l], params["ffn_ln_b"][l])

    pooled = jnp.tanh(x[:, 0, :] @ params["pool_w"] + params["pool_b"][0])
    return pooled @ params["out_w"] + params["out_b"][0]


# ------------------------------ parameter init --------------------------------
def init_params(key):
    p = {}

    def nxt():
        nonlocal key
        key, sub = jax.random.split(key)
        return sub

    std = 0.02
    L, H, I = N_LAYERS, HIDDEN, INTERMEDIATE
    p["word_emb"] = std * jax.random.normal(nxt(), (VOCAB, H), jnp.float32)
    p["pos_emb"] = std * jax.random.normal(nxt(), (SEQ, H), jnp.float32)
    p["tok_emb"] = std * jax.random.normal(nxt(), (2, H), jnp.float32)
    p["emb_ln_g"] = jnp.ones((1, H), jnp.float32)
    p["emb_ln_b"] = jnp.zeros((1, H), jnp.float32)

    for name in ("wq", "wk", "wv", "wo"):
        p[name] = std * jax.random.normal(nxt(), (L, H, H), jnp.float32)
    for name in ("bq", "bk", "bv", "bo"):
        p[name] = jnp.zeros((L, 1, H), jnp.float32)
    p["attn_ln_g"] = jnp.ones((L, 1, H), jnp.float32)
    p["attn_ln_b"] = jnp.zeros((L, 1, H), jnp.float32)
    p["w1"] = std * jax.random.normal(nxt(), (L, H, I), jnp.float32)
    p["b1"] = jnp.zeros((L, 1, I), jnp.float32)
    p["w2"] = std * jax.random.normal(nxt(), (L, I, H), jnp.float32)
    p["b2"] = jnp.zeros((L, 1, H), jnp.float32)
    p["ffn_ln_g"] = jnp.ones((L, 1, H), jnp.float32)
    p["ffn_ln_b"] = jnp.zeros((L, 1, H), jnp.float32)

    p["pool_w"] = std * jax.random.normal(nxt(), (H, H), jnp.float32)
    p["pool_b"] = jnp.zeros((1, H), jnp.float32)
    p["out_w"] = std * jax.random.normal(nxt(), (H, N_CLASSES), jnp.float32)
    p["out_b"] = jnp.zeros((1, N_CLASSES), jnp.float32)
    return p


# ------------------------------------ main -------------------------------------
if __name__ == "__main__":
    key = jax.random.PRNGKey(0)
    k_ids, k_params = jax.random.split(key)

    input_ids = jax.random.randint(k_ids, (BATCH, SEQ), 0, VOCAB, dtype=jnp.int32)
    # second example has its last two tokens padded out
    attention_mask = (jnp.arange(SEQ)[None, :] < jnp.array([[SEQ], [SEQ - 2]])).astype(jnp.int32)

    params = init_params(k_params)

    logits = sentiment_classifier_forward(params, input_ids, attention_mask)
    logits = jax.block_until_ready(logits)

    assert logits.shape == (BATCH, N_CLASSES) and logits.dtype == jnp.float32

    # self-check against a pure-JAX reference (loose tol: approx softmax reciprocal in-kernel)
    ref = _reference_forward(params, input_ids, attention_mask)
    assert jnp.allclose(logits, ref, rtol=2e-2, atol=2e-3), (logits, ref)

    print("KERNEL_OK")
</pallas_src>

<mosaic_0001>
module attributes {stable_mosaic.version = 11 : i64} {
  func.func @bert_fused_kernel(%arg0: i32, %arg1: memref<16x32xf32, #tpu.memory_space<vmem>>, %arg2: memref<16x16xf32, #tpu.memory_space<vmem>>, %arg3: memref<2x32x192xf32, #tpu.memory_space<vmem>>, %arg4: memref<2x96x64xf32, #tpu.memory_space<vmem>>, %arg5: memref<32x160xf32, #tpu.memory_space<vmem>>, %arg6: memref<5x256xf32, #tpu.memory_space<vmem>>, %arg7: memref<2x128xf32, #tpu.memory_space<vmem>>) attributes {dimension_semantics = [#tpu.dimension_semantics<arbitrary>], iteration_bounds = array<i64: 1>, scalar_prefetch = 0 : i64, scratch_operands = 0 : i64, tpu.core_type = #tpu.core_type<tc>, window_params = [{pipeline_mode = #tpu.pipeline_mode<synchronous>, transform_indices = @transform_0, window_bounds = array<i64: 16, 32>}, {pipeline_mode = #tpu.pipeline_mode<synchronous>, transform_indices = @transform_1, window_bounds = array<i64: 16, 16>}, {pipeline_mode = #tpu.pipeline_mode<synchronous>, transform_indices = @transform_2, window_bounds = array<i64: 2, 32, 192>}, {pipeline_mode = #tpu.pipeline_mode<synchronous>, transform_indices = @transform_3, window_bounds = array<i64: 2, 96, 64>}, {pipeline_mode = #tpu.pipeline_mode<synchronous>, transform_indices = @transform_4, window_bounds = array<i64: 32, 160>}, {pipeline_mode = #tpu.pipeline_mode<synchronous>, transform_indices = @transform_5, window_bounds = array<i64: 5, 256>}, {pipeline_mode = #tpu.pipeline_mode<synchronous>, transform_indices = @transform_6, window_bounds = array<i64: 2, 128>}]} {
    %c0 = arith.constant 0 : index
    %c0_0 = arith.constant 0 : index
    %0 = vector.load %arg2[%c0, %c0_0] : memref<16x16xf32, #tpu.memory_space<vmem>>, vector<16x16xf32>
    %c0_1 = arith.constant 0 : index
    %c0_2 = arith.constant 0 : index
    %1 = vector.load %arg1[%c0_1, %c0_2] : memref<16x32xf32, #tpu.memory_space<vmem>>, vector<16x32xf32>
    %c0_3 = arith.constant 0 : index
    %c0_4 = arith.constant 0 : index
    %2 = vector.load %arg6[%c0_3, %c0_4] : memref<5x256xf32, #tpu.memory_space<vmem>>, vector<1x32xf32>
    %c0_5 = arith.constant 0 : index
    %c32 = arith.constant 32 : index
    %3 = vector.load %arg6[%c0_5, %c32] : memref<5x256xf32, #tpu.memory_space<vmem>>, vector<1x32xf32>
    %cst = arith.constant dense<0.000000e+00> : vector<16xf32>
    %4 = vector.multi_reduction <add>, %1, %cst [1] : vector<16x32xf32> to vector<16xf32>
    %5 = vector.shape_cast %4 : vector<16xf32> to vector<16x1xf32>
    %cst_6 = arith.constant 3.200000e+01 : f32
    %6 = vector.broadcast %cst_6 : f32 to vector<16x1xf32>
    %7 = arith.divf %5, %6 : vector<16x1xf32>
    %8 = vector.broadcast %7 : vector<16x1xf32> to vector<16x32xf32>
    %9 = arith.subf %1, %8 : vector<16x32xf32>
    %10 = arith.mulf %9, %9 : vector<16x32xf32>
    %cst_7 = arith.constant dense<0.000000e+00> : vector<16xf32>
    %11 = vector.multi_reduction <add>, %10, %cst_7 [1] : vector<16x32xf32> to vector<16xf32>
    %12 = vector.shape_cast %11 : vector<16xf32> to vector<16x1xf32>
    %cst_8 = arith.constant 3.200000e+01 : f32
    %13 = vector.broadcast %cst_8 : f32 to vector<16x1xf32>
    %14 = arith.divf %12, %13 : vector<16x1xf32>
    %15 = vector.broadcast %7 : vector<16x1xf32> to vector<16x32xf32>
    %16 = arith.subf %1, %15 : vector<16x32xf32>
    %cst_9 = arith.constant 9.99999996E-13 : f32
    %17 = vector.broadcast %cst_9 : f32 to vector<16x1xf32>
    %18 = arith.addf %14, %17 : vector<16x1xf32>
    %19 = math.rsqrt %18 : vector<16x1xf32>
    %20 = vector.broadcast %19 : vector<16x1xf32> to vector<16x32xf32>
    %21 = arith.mulf %16, %20 : vector<16x32xf32>
    %22 = vector.broadcast %2 : vector<1x32xf32> to vector<16x32xf32>
    %23 = arith.mulf %21, %22 : vector<16x32xf32>
    %24 = vector.broadcast %3 : vector<1x32xf32> to vector<16x32xf32>
    %25 = arith.addf %23, %24 : vector<16x32xf32>
    %c0_10 = arith.constant 0 : index
    %c0_11 = arith.constant 0 : index
    %c0_12 = arith.constant 0 : index
    %26 = vector.load %arg3[%c0_10, %c0_11, %c0_12] : memref<2x32x192xf32, #tpu.memory_space<vmem>>, vector<1x32x192xf32>
    %27 = vector.shape_cast %26 : vector<1x32x192xf32> to vector<32x192xf32>
    %cst_13 = arith.constant dense<0.000000e+00> : vector<16x192xf32>
    %28 = tpu.matmul %25, %27, %cst_13 {dimension_numbers = #tpu.dot_dimension_numbers<[1], [0], [0], [1], [0, 0, 1, 1], [], []>} : vector<16x32xf32>, vector<32x192xf32>, vector<16x192xf32> -> vector<16x192xf32>
    %c1 = arith.constant 1 : index
    %c0_14 = arith.constant 0 : index
    %29 = vector.load %arg6[%c1, %c0_14] : memref<5x256xf32, #tpu.memory_space<vmem>>, vector<1x192xf32>
    %30 = vector.broadcast %29 : vector<1x192xf32> to vector<16x192xf32>
    %31 = arith.addf %28, %30 : vector<16x192xf32>
    %c1_15 = arith.constant 1 : index
    %c192 = arith.constant 192 : index
    %32 = vector.load %arg6[%c1_15, %c192] : memref<5x256xf32, #tpu.memory_space<vmem>>, vector<1x32xf32>
    %33 = vector.extract_strided_slice %31 {offsets = [0, 0], sizes = [16, 8], strides = [1, 1]} : vector<16x192xf32> to vector<16x8xf32>
    %34 = vector.extract_strided_slice %31 {offsets = [0, 32], sizes = [16, 8], strides = [1, 1]} : vector<16x192xf32> to vector<16x8xf32>
    %35 = vector.extract_strided_slice %31 {offsets = [0, 64], sizes = [16, 32], strides = [1, 1]} : vector<16x192xf32> to vector<16x32xf32>
    %cst_16 = arith.constant dense<0.000000e+00> : vector<16x16xf32>
    %36 = tpu.matmul %33, %34, %cst_16 {dimension_numbers = #tpu.dot_dimension_numbers<[1], [1], [0], [0], [0, 0, 1, 0], [], []>} : vector<16x8xf32>, vector<16x8xf32>, vector<16x16xf32> -> vector<16x16xf32>
    %cst_17 = arith.constant 0.353553385 : f32
    %37 = vector.broadcast %cst_17 : f32 to vector<16x16xf32>
    %38 = arith.mulf %36, %37 : vector<16x16xf32>
    %39 = arith.addf %38, %0 : vector<16x16xf32>
    %cst_18 = arith.constant dense<0xFF800000> : vector<16xf32>
    %40 = vector.multi_reduction <maximumf>, %39, %cst_18 [1] : vector<16x16xf32> to vector<16xf32>
    %41 = vector.shape_cast %40 : vector<16xf32> to vector<16x1xf32>
    %42 = vector.broadcast %41 : vector<16x1xf32> to vector<16x16xf32>
    %43 = arith.subf %39, %42 : vector<16x16xf32>
    %44 = math.exp %43 : vector<16x16xf32>
    %cst_19 = arith.constant dense<0.000000e+00> : vector<16xf32>
    %45 = vector.multi_reduction <add>, %44, %cst_19 [1] : vector<16x16xf32> to vector<16xf32>
    %46 = vector.shape_cast %45 : vector<16xf32> to vector<16x1xf32>
    %47 = tpu.reciprocal %46 {approx = true} : vector<16x1xf32> -> vector<16x1xf32>
    %48 = vector.broadcast %47 : vector<16x1xf32> to vector<16x16xf32>
    %49 = arith.mulf %44, %48 : vector<16x16xf32>
    %cst_20 = arith.constant dense<0.000000e+00> : vector<16x32xf32>
    %50 = tpu.matmul %49, %35, %cst_20 {dimension_numbers = #tpu.dot_dimension_numbers<[1], [0], [0], [1], [0, 0, 1, 1], [], []>} : vector<16x16xf32>, vector<16x32xf32>, vector<16x32xf32> -> vector<16x32xf32>
    %51 = vector.broadcast %32 : vector<1x32xf32> to vector<16x32xf32>
    %52 = arith.addf %51, %50 : vector<16x32xf32>
    %53 = vector.extract_strided_slice %31 {offsets = [0, 8], sizes = [16, 8], strides = [1, 1]} : vector<16x192xf32> to vector<16x8xf32>
    %54 = vector.extract_strided_slice %31 {offsets = [0, 40], sizes = [16, 8], strides = [1, 1]} : vector<16x192xf32> to vector<16x8xf32>
    %55 = vector.extract_strided_slice %31 {offsets = [0, 96], sizes = [16, 32], strides = [1, 1]} : vector<16x192xf32> to vector<16x32xf32>
    %cst_21 = arith.constant dense<0.000000e+00> : vector<16x16xf32>
    %56 = tpu.matmul %53, %54, %cst_21 {dimension_numbers = #tpu.dot_dimension_numbers<[1], [1], [0], [0], [0, 0, 1, 0], [], []>} : vector<16x8xf32>, vector<16x8xf32>, vector<16x16xf32> -> vector<16x16xf32>
    %cst_22 = arith.constant 0.353553385 : f32
    %57 = vector.broadcast %cst_22 : f32 to vector<16x16xf32>
    %58 = arith.mulf %56, %57 : vector<16x16xf32>
    %59 = arith.addf %58, %0 : vector<16x16xf32>
    %cst_23 = arith.constant dense<0xFF800000> : vector<16xf32>
    %60 = vector.multi_reduction <maximumf>, %59, %cst_23 [1] : vector<16x16xf32> to vector<16xf32>
    %61 = vector.shape_cast %60 : vector<16xf32> to vector<16x1xf32>
    %62 = vector.broadcast %61 : vector<16x1xf32> to vector<16x16xf32>
    %63 = arith.subf %59, %62 : vector<16x16xf32>
    %64 = math.exp %63 : vector<16x16xf32>
    %cst_24 = arith.constant dense<0.000000e+00> : vector<16xf32>
    %65 = vector.multi_reduction <add>, %64, %cst_24 [1] : vector<16x16xf32> to vector<16xf32>
    %66 = vector.shape_cast %65 : vector<16xf32> to vector<16x1xf32>
    %67 = tpu.reciprocal %66 {approx = true} : vector<16x1xf32> -> vector<16x1xf32>
    %68 = vector.broadcast %67 : vector<16x1xf32> to vector<16x16xf32>
    %69 = arith.mulf %64, %68 : vector<16x16xf32>
    %cst_25 = arith.constant dense<0.000000e+00> : vector<16x32xf32>
    %70 = tpu.matmul %69, %55, %cst_25 {dimension_numbers = #tpu.dot_dimension_numbers<[1], [0], [0], [1], [0, 0, 1, 1], [], []>} : vector<16x16xf32>, vector<16x32xf32>, vector<16x32xf32> -> vector<16x32xf32>
    %71 = arith.addf %52, %70 : vector<16x32xf32>
    %72 = vector.extract_strided_slice %31 {offsets = [0, 16], sizes = [16, 8], strides = [1, 1]} : vector<16x192xf32> to vector<16x8xf32>
    %73 = vector.extract_strided_slice %31 {offsets = [0, 48], sizes = [16, 8], strides = [1, 1]} : vector<16x192xf32> to vector<16x8xf32>
    %74 = vector.extract_strided_slice %31 {offsets = [0, 128], sizes = [16, 32], strides = [1, 1]} : vector<16x192xf32> to vector<16x32xf32>
    %cst_26 = arith.constant dense<0.000000e+00> : vector<16x16xf32>
    %75 = tpu.matmul %72, %73, %cst_26 {dimension_numbers = #tpu.dot_dimension_numbers<[1], [1], [0], [0], [0, 0, 1, 0], [], []>} : vector<16x8xf32>, vector<16x8xf32>, vector<16x16xf32> -> vector<16x16xf32>
    %cst_27 = arith.constant 0.353553385 : f32
    %76 = vector.broadcast %cst_27 : f32 to vector<16x16xf32>
    %77 = arith.mulf %75, %76 : vector<16x16xf32>
    %78 = arith.addf %77, %0 : vector<16x16xf32>
    %cst_28 = arith.constant dense<0xFF800000> : vector<16xf32>
    %79 = vector.multi_reduction <maximumf>, %78, %cst_28 [1] : vector<16x16xf32> to vector<16xf32>
    %80 = vector.shape_cast %79 : vector<16xf32> to vector<16x1xf32>
    %81 = vector.broadcast %80 : vector<16x1xf32> to vector<16x16xf32>
    %82 = arith.subf %78, %81 : vector<16x16xf32>
    %83 = math.exp %82 : vector<16x16xf32>
    %cst_29 = arith.constant dense<0.000000e+00> : vector<16xf32>
    %84 = vector.multi_reduction <add>, %83, %cst_29 [1] : vector<16x16xf32> to vector<16xf32>
    %85 = vector.shape_cast %84 : vector<16xf32> to vector<16x1xf32>
    %86 = tpu.reciprocal %85 {approx = true} : vector<16x1xf32> -> vector<16x1xf32>
    %87 = vector.broadcast %86 : vector<16x1xf32> to vector<16x16xf32>
    %88 = arith.mulf %83, %87 : vector<16x16xf32>
    %cst_30 = arith.constant dense<0.000000e+00> : vector<16x32xf32>
    %89 = tpu.matmul %88, %74, %cst_30 {dimension_numbers = #tpu.dot_dimension_numbers<[1], [0], [0], [1], [0, 0, 1, 1], [], []>} : vector<16x16xf32>, vector<16x32xf32>, vector<16x32xf32> -> vector<16x32xf32>
    %90 = arith.addf %71, %89 : vector<16x32xf32>
    %91 = vector.extract_strided_slice %31 {offsets = [0, 24], sizes = [16, 8], strides = [1, 1]} : vector<16x192xf32> to vector<16x8xf32>
    %92 = vector.extract_strided_slice %31 {offsets = [0, 56], sizes = [16, 8], strides = [1, 1]} : vector<16x192xf32> to vector<16x8xf32>
    %93 = vector.extract_strided_slice %31 {offsets = [0, 160], sizes = [16, 32], strides = [1, 1]} : vector<16x192xf32> to vector<16x32xf32>
    %cst_31 = arith.constant dense<0.000000e+00> : vector<16x16xf32>
    %94 = tpu.matmul %91, %92, %cst_31 {dimension_numbers = #tpu.dot_dimension_numbers<[1], [1], [0], [0], [0, 0, 1, 0], [], []>} : vector<16x8xf32>, vector<16x8xf32>, vector<16x16xf32> -> vector<16x16xf32>
    %cst_32 = arith.constant 0.353553385 : f32
    %95 = vector.broadcast %cst_32 : f32 to vector<16x16xf32>
    %96 = arith.mulf %94, %95 : vector<16x16xf32>
    %97 = arith.addf %96, %0 : vector<16x16xf32>
    %cst_33 = arith.constant dense<0xFF800000> : vector<16xf32>
    %98 = vector.multi_reduction <maximumf>, %97, %cst_33 [1] : vector<16x16xf32> to vector<16xf32>
    %99 = vector.shape_cast %98 : vector<16xf32> to vector<16x1xf32>
    %100 = vector.broadcast %99 : vector<16x1xf32> to vector<16x16xf32>
    %101 = arith.subf %97, %100 : vector<16x16xf32>
    %102 = math.exp %101 : vector<16x16xf32>
    %cst_34 = arith.constant dense<0.000000e+00> : vector<16xf32>
    %103 = vector.multi_reduction <add>, %102, %cst_34 [1] : vector<16x16xf32> to vector<16xf32>
    %104 = vector.shape_cast %103 : vector<16xf32> to vector<16x1xf32>
    %105 = tpu.reciprocal %104 {approx = true} : vector<16x1xf32> -> vector<16x1xf32>
    %106 = vector.broadcast %105 : vector<16x1xf32> to vector<16x16xf32>
    %107 = arith.mulf %102, %106 : vector<16x16xf32>
    %cst_35 = arith.constant dense<0.000000e+00> : vector<16x32xf32>
    %108 = tpu.matmul %107, %93, %cst_35 {dimension_numbers = #tpu.dot_dimension_numbers<[1], [0], [0], [1], [0, 0, 1, 1], [], []>} : vector<16x16xf32>, vector<16x32xf32>, vector<16x32xf32> -> vector<16x32xf32>
    %109 = arith.addf %90, %108 : vector<16x32xf32>
    %110 = arith.addf %25, %109 : vector<16x32xf32>
    %c2 = arith.constant 2 : index
    %c0_36 = arith.constant 0 : index
    %111 = vector.load %arg6[%c2, %c0_36] : memref<5x256xf32, #tpu.memory_space<vmem>>, vector<1x32xf32>
    %c2_37 = arith.constant 2 : index
    %c32_38 = arith.constant 32 : index
    %112 = vector.load %arg6[%c2_37, %c32_38] : memref<5x256xf32, #tpu.memory_space<vmem>>, vector<1x32xf32>
    %cst_39 = arith.constant dense<0.000000e+00> : vector<16xf32>
    %113 = vector.multi_reduction <add>, %110, %cst_39 [1] : vector<16x32xf32> to vector<16xf32>
    %114 = vector.shape_cast %113 : vector<16xf32> to vector<16x1xf32>
    %cst_40 = arith.constant 3.200000e+01 : f32
    %115 = vector.broadcast %cst_40 : f32 to vector<16x1xf32>
    %116 = arith.divf %114, %115 : vector<16x1xf32>
    %117 = vector.broadcast %116 : vector<16x1xf32> to vector<16x32xf32>
    %118 = arith.subf %110, %117 : vector<16x32xf32>
    %119 = arith.mulf %118, %118 : vector<16x32xf32>
    %cst_41 = arith.constant dense<0.000000e+00> : vector<16xf32>
    %120 = vector.multi_reduction <add>, %119, %cst_41 [1] : vector<16x32xf32> to vector<16xf32>
    %121 = vector.shape_cast %120 : vector<16xf32> to vector<16x1xf32>
    %cst_42 = arith.constant 3.200000e+01 : f32
    %122 = vector.broadcast %cst_42 : f32 to vector<16x1xf32>
    %123 = arith.divf %121, %122 : vector<16x1xf32>
    %124 = vector.broadcast %116 : vector<16x1xf32> to vector<16x32xf32>
    %125 = arith.subf %110, %124 : vector<16x32xf32>
    %cst_43 = arith.constant 9.99999996E-13 : f32
    %126 = vector.broadcast %cst_43 : f32 to vector<16x1xf32>
    %127 = arith.addf %123, %126 : vector<16x1xf32>
    %128 = math.rsqrt %127 : vector<16x1xf32>
    %129 = vector.broadcast %128 : vector<16x1xf32> to vector<16x32xf32>
    %130 = arith.mulf %125, %129 : vector<16x32xf32>
    %131 = vector.broadcast %111 : vector<1x32xf32> to vector<16x32xf32>
    %132 = arith.mulf %130, %131 : vector<16x32xf32>
    %133 = vector.broadcast %112 : vector<1x32xf32> to vector<16x32xf32>
    %134 = arith.addf %132, %133 : vector<16x32xf32>
    %c0_44 = arith.constant 0 : index
    %c0_45 = arith.constant 0 : index
    %c0_46 = arith.constant 0 : index
    %135 = vector.load %arg4[%c0_44, %c0_45, %c0_46] : memref<2x96x64xf32, #tpu.memory_space<vmem>>, vector<1x96x64xf32>
    %136 = vector.shape_cast %135 : vector<1x96x64xf32> to vector<96x64xf32>
    %137 = vector.extract_strided_slice %136 {offsets = [0, 0], sizes = [32, 64], strides = [1, 1]} : vector<96x64xf32> to vector<32x64xf32>
    %cst_47 = arith.constant dense<0.000000e+00> : vector<16x64xf32>
    %138 = tpu.matmul %134, %137, %cst_47 {dimension_numbers = #tpu.dot_dimension_numbers<[1], [0], [0], [1], [0, 0, 1, 1], [], []>} : vector<16x32xf32>, vector<32x64xf32>, vector<16x64xf32> -> vector<16x64xf32>
    %c2_48 = arith.constant 2 : index
    %c64 = arith.constant 64 : index
    %139 = vector.load %arg6[%c2_48, %c64] : memref<5x256xf32, #tpu.memory_space<vmem>>, vector<1x64xf32>
    %140 = vector.broadcast %139 : vector<1x64xf32> to vector<16x64xf32>
    %141 = arith.addf %138, %140 : vector<16x64xf32>
    %142 = arith.mulf %141, %141 : vector<16x64xf32>
    %143 = arith.mulf %141, %142 : vector<16x64xf32>
    %cst_49 = arith.constant 4.471500e-02 : f32
    %144 = vector.broadcast %cst_49 : f32 to vector<16x64xf32>
    %145 = arith.mulf %144, %143 : vector<16x64xf32>
    %146 = arith.addf %141, %145 : vector<16x64xf32>
    %cst_50 = arith.constant 0.797884583 : f32
    %147 = vector.broadcast %cst_50 : f32 to vector<16x64xf32>
    %148 = arith.mulf %147, %146 : vector<16x64xf32>
    %149 = math.tanh %148 : vector<16x64xf32>
    %cst_51 = arith.constant 1.000000e+00 : f32
    %150 = vector.broadcast %cst_51 : f32 to vector<16x64xf32>
    %151 = arith.addf %150, %149 : vector<16x64xf32>
    %cst_52 = arith.constant 5.000000e-01 : f32
    %152 = vector.broadcast %cst_52 : f32 to vector<16x64xf32>
    %153 = arith.mulf %152, %151 : vector<16x64xf32>
    %154 = arith.mulf %141, %153 : vector<16x64xf32>
    %155 = vector.extract_strided_slice %136 {offsets = [32, 0], sizes = [64, 32], strides = [1, 1]} : vector<96x64xf32> to vector<64x32xf32>
    %cst_53 = arith.constant dense<0.000000e+00> : vector<16x32xf32>
    %156 = tpu.matmul %154, %155, %cst_53 {dimension_numbers = #tpu.dot_dimension_numbers<[1], [0], [0], [1], [0, 0, 1, 1], [], []>} : vector<16x64xf32>, vector<64x32xf32>, vector<16x32xf32> -> vector<16x32xf32>
    %c2_54 = arith.constant 2 : index
    %c128 = arith.constant 128 : index
    %157 = vector.load %arg6[%c2_54, %c128] : memref<5x256xf32, #tpu.memory_space<vmem>>, vector<1x32xf32>
    %158 = vector.broadcast %157 : vector<1x32xf32> to vector<16x32xf32>
    %159 = arith.addf %156, %158 : vector<16x32xf32>
    %160 = arith.addf %134, %159 : vector<16x32xf32>
    %c2_55 = arith.constant 2 : index
    %c160 = arith.constant 160 : index
    %161 = vector.load %arg6[%c2_55, %c160] : memref<5x256xf32, #tpu.memory_space<vmem>>, vector<1x32xf32>
    %c2_56 = arith.constant 2 : index
    %c192_57 = arith.constant 192 : index
    %162 = vector.load %arg6[%c2_56, %c192_57] : memref<5x256xf32, #tpu.memory_space<vmem>>, vector<1x32xf32>
    %cst_58 = arith.constant dense<0.000000e+00> : vector<16xf32>
    %163 = vector.multi_reduction <add>, %160, %cst_58 [1] : vector<16x32xf32> to vector<16xf32>
    %164 = vector.shape_cast %163 : vector<16xf32> to vector<16x1xf32>
    %cst_59 = arith.constant 3.200000e+01 : f32
    %165 = vector.broadcast %cst_59 : f32 to vector<16x1xf32>
    %166 = arith.divf %164, %165 : vector<16x1xf32>
    %167 = vector.broadcast %166 : vector<16x1xf32> to vector<16x32xf32>
    %168 = arith.subf %160, %167 : vector<16x32xf32>
    %169 = arith.mulf %168, %168 : vector<16x32xf32>
    %cst_60 = arith.constant dense<0.000000e+00> : vector<16xf32>
    %170 = vector.multi_reduction <add>, %169, %cst_60 [1] : vector<16x32xf32> to vector<16xf32>
    %171 = vector.shape_cast %170 : vector<16xf32> to vector<16x1xf32>
    %cst_61 = arith.constant 3.200000e+01 : f32
    %172 = vector.broadcast %cst_61 : f32 to vector<16x1xf32>
    %173 = arith.divf %171, %172 : vector<16x1xf32>
    %174 = vector.broadcast %166 : vector<16x1xf32> to vector<16x32xf32>
    %175 = arith.subf %160, %174 : vector<16x32xf32>
    %cst_62 = arith.constant 9.99999996E-13 : f32
    %176 = vector.broadcast %cst_62 : f32 to vector<16x1xf32>
    %177 = arith.addf %173, %176 : vector<16x1xf32>
    %178 = math.rsqrt %177 : vector<16x1xf32>
    %179 = vector.broadcast %178 : vector<16x1xf32> to vector<16x32xf32>
    %180 = arith.mulf %175, %179 : vector<16x32xf32>
    %181 = vector.broadcast %161 : vector<1x32xf32> to vector<16x32xf32>
    %182 = arith.mulf %180, %181 : vector<16x32xf32>
    %183 = vector.broadcast %162 : vector<1x32xf32> to vector<16x32xf32>
    %184 = arith.addf %182, %183 : vector<16x32xf32>
    %c1_63 = arith.constant 1 : index
    %c0_64 = arith.constant 0 : index
    %c0_65 = arith.constant 0 : index
    %185 = vector.load %arg3[%c1_63, %c0_64, %c0_65] : memref<2x32x192xf32, #tpu.memory_space<vmem>>, vector<1x32x192xf32>
    %186 = vector.shape_cast %185 : vector<1x32x192xf32> to vector<32x192xf32>
    %cst_66 = arith.constant dense<0.000000e+00> : vector<16x192xf32>
    %187 = tpu.matmul %184, %186, %cst_66 {dimension_numbers = #tpu.dot_dimension_numbers<[1], [0], [0], [1], [0, 0, 1, 1], [], []>} : vector<16x32xf32>, vector<32x192xf32>, vector<16x192xf32> -> vector<16x192xf32>
    %c3 = arith.constant 3 : index
    %c0_67 = arith.constant 0 : index
    %188 = vector.load %arg6[%c3, %c0_67] : memref<5x256xf32, #tpu.memory_space<vmem>>, vector<1x192xf32>
    %189 = vector.broadcast %188 : vector<1x192xf32> to vector<16x192xf32>
    %190 = arith.addf %187, %189 : vector<16x192xf32>
    %c3_68 = arith.constant 3 : index
    %c192_69 = arith.constant 192 : index
    %191 = vector.load %arg6[%c3_68, %c192_69] : memref<5x256xf32, #tpu.memory_space<vmem>>, vector<1x32xf32>
    %192 = vector.extract_strided_slice %190 {offsets = [0, 0], sizes = [16, 8], strides = [1, 1]} : vector<16x192xf32> to vector<16x8xf32>
    %193 = vector.extract_strided_slice %190 {offsets = [0, 32], sizes = [16, 8], strides = [1, 1]} : vector<16x192xf32> to vector<16x8xf32>
    %194 = vector.extract_strided_slice %190 {offsets = [0, 64], sizes = [16, 32], strides = [1, 1]} : vector<16x192xf32> to vector<16x32xf32>
    %cst_70 = arith.constant dense<0.000000e+00> : vector<16x16xf32>
    %195 = tpu.matmul %192, %193, %cst_70 {dimension_numbers = #tpu.dot_dimension_numbers<[1], [1], [0], [0], [0, 0, 1, 0], [], []>} : vector<16x8xf32>, vector<16x8xf32>, vector<16x16xf32> -> vector<16x16xf32>
    %cst_71 = arith.constant 0.353553385 : f32
    %196 = vector.broadcast %cst_71 : f32 to vector<16x16xf32>
    %197 = arith.mulf %195, %196 : vector<16x16xf32>
    %198 = arith.addf %197, %0 : vector<16x16xf32>
    %cst_72 = arith.constant dense<0xFF800000> : vector<16xf32>
    %199 = vector.multi_reduction <maximumf>, %198, %cst_72 [1] : vector<16x16xf32> to vector<16xf32>
    %200 = vector.shape_cast %199 : vector<16xf32> to vector<16x1xf32>
    %201 = vector.broadcast %200 : vector<16x1xf32> to vector<16x16xf32>
    %202 = arith.subf %198, %201 : vector<16x16xf32>
    %203 = math.exp %202 : vector<16x16xf32>
    %cst_73 = arith.constant dense<0.000000e+00> : vector<16xf32>
    %204 = vector.multi_reduction <add>, %203, %cst_73 [1] : vector<16x16xf32> to vector<16xf32>
    %205 = vector.shape_cast %204 : vector<16xf32> to vector<16x1xf32>
    %206 = tpu.reciprocal %205 {approx = true} : vector<16x1xf32> -> vector<16x1xf32>
    %207 = vector.broadcast %206 : vector<16x1xf32> to vector<16x16xf32>
    %208 = arith.mulf %203, %207 : vector<16x16xf32>
    %cst_74 = arith.constant dense<0.000000e+00> : vector<16x32xf32>
    %209 = tpu.matmul %208, %194, %cst_74 {dimension_numbers = #tpu.dot_dimension_numbers<[1], [0], [0], [1], [0, 0, 1, 1], [], []>} : vector<16x16xf32>, vector<16x32xf32>, vector<16x32xf32> -> vector<16x32xf32>
    %210 = vector.broadcast %191 : vector<1x32xf32> to vector<16x32xf32>
    %211 = arith.addf %210, %209 : vector<16x32xf32>
    %212 = vector.extract_strided_slice %190 {offsets = [0, 8], sizes = [16, 8], strides = [1, 1]} : vector<16x192xf32> to vector<16x8xf32>
    %213 = vector.extract_strided_slice %190 {offsets = [0, 40], sizes = [16, 8], strides = [1, 1]} : vector<16x192xf32> to vector<16x8xf32>
    %214 = vector.extract_strided_slice %190 {offsets = [0, 96], sizes = [16, 32], strides = [1, 1]} : vector<16x192xf32> to vector<16x32xf32>
    %cst_75 = arith.constant dense<0.000000e+00> : vector<16x16xf32>
    %215 = tpu.matmul %212, %213, %cst_75 {dimension_numbers = #tpu.dot_dimension_numbers<[1], [1], [0], [0], [0, 0, 1, 0], [], []>} : vector<16x8xf32>, vector<16x8xf32>, vector<16x16xf32> -> vector<16x16xf32>
    %cst_76 = arith.constant 0.353553385 : f32
    %216 = vector.broadcast %cst_76 : f32 to vector<16x16xf32>
    %217 = arith.mulf %215, %216 : vector<16x16xf32>
    %218 = arith.addf %217, %0 : vector<16x16xf32>
    %cst_77 = arith.constant dense<0xFF800000> : vector<16xf32>
    %219 = vector.multi_reduction <maximumf>, %218, %cst_77 [1] : vector<16x16xf32> to vector<16xf32>
    %220 = vector.shape_cast %219 : vector<16xf32> to vector<16x1xf32>
    %221 = vector.broadcast %220 : vector<16x1xf32> to vector<16x16xf32>
    %222 = arith.subf %218, %221 : vector<16x16xf32>
    %223 = math.exp %222 : vector<16x16xf32>
    %cst_78 = arith.constant dense<0.000000e+00> : vector<16xf32>
    %224 = vector.multi_reduction <add>, %223, %cst_78 [1] : vector<16x16xf32> to vector<16xf32>
    %225 = vector.shape_cast %224 : vector<16xf32> to vector<16x1xf32>
    %226 = tpu.reciprocal %225 {approx = true} : vector<16x1xf32> -> vector<16x1xf32>
    %227 = vector.broadcast %226 : vector<16x1xf32> to vector<16x16xf32>
    %228 = arith.mulf %223, %227 : vector<16x16xf32>
    %cst_79 = arith.constant dense<0.000000e+00> : vector<16x32xf32>
    %229 = tpu.matmul %228, %214, %cst_79 {dimension_numbers = #tpu.dot_dimension_numbers<[1], [0], [0], [1], [0, 0, 1, 1], [], []>} : vector<16x16xf32>, vector<16x32xf32>, vector<16x32xf32> -> vector<16x32xf32>
    %230 = arith.addf %211, %229 : vector<16x32xf32>
    %231 = vector.extract_strided_slice %190 {offsets = [0, 16], sizes = [16, 8], strides = [1, 1]} : vector<16x192xf32> to vector<16x8xf32>
    %232 = vector.extract_strided_slice %190 {offsets = [0, 48], sizes = [16, 8], strides = [1, 1]} : vector<16x192xf32> to vector<16x8xf32>
    %233 = vector.extract_strided_slice %190 {offsets = [0, 128], sizes = [16, 32], strides = [1, 1]} : vector<16x192xf32> to vector<16x32xf32>
    %cst_80 = arith.constant dense<0.000000e+00> : vector<16x16xf32>
    %234 = tpu.matmul %231, %232, %cst_80 {dimension_numbers = #tpu.dot_dimension_numbers<[1], [1], [0], [0], [0, 0, 1, 0], [], []>} : vector<16x8xf32>, vector<16x8xf32>, vector<16x16xf32> -> vector<16x16xf32>
    %cst_81 = arith.constant 0.353553385 : f32
    %235 = vector.broadcast %cst_81 : f32 to vector<16x16xf32>
    %236 = arith.mulf %234, %235 : vector<16x16xf32>
    %237 = arith.addf %236, %0 : vector<16x16xf32>
    %cst_82 = arith.constant dense<0xFF800000> : vector<16xf32>
    %238 = vector.multi_reduction <maximumf>, %237, %cst_82 [1] : vector<16x16xf32> to vector<16xf32>
    %239 = vector.shape_cast %238 : vector<16xf32> to vector<16x1xf32>
    %240 = vector.broadcast %239 : vector<16x1xf32> to vector<16x16xf32>
    %241 = arith.subf %237, %240 : vector<16x16xf32>
    %242 = math.exp %241 : vector<16x16xf32>
    %cst_83 = arith.constant dense<0.000000e+00> : vector<16xf32>
    %243 = vector.multi_reduction <add>, %242, %cst_83 [1] : vector<16x16xf32> to vector<16xf32>
    %244 = vector.shape_cast %243 : vector<16xf32> to vector<16x1xf32>
    %245 = tpu.reciprocal %244 {approx = true} : vector<16x1xf32> -> vector<16x1xf32>
    %246 = vector.broadcast %245 : vector<16x1xf32> to vector<16x16xf32>
    %247 = arith.mulf %242, %246 : vector<16x16xf32>
    %cst_84 = arith.constant dense<0.000000e+00> : vector<16x32xf32>
    %248 = tpu.matmul %247, %233, %cst_84 {dimension_numbers = #tpu.dot_dimension_numbers<[1], [0], [0], [1], [0, 0, 1, 1], [], []>} : vector<16x16xf32>, vector<16x32xf32>, vector<16x32xf32> -> vector<16x32xf32>
    %249 = arith.addf %230, %248 : vector<16x32xf32>
    %250 = vector.extract_strided_slice %190 {offsets = [0, 24], sizes = [16, 8], strides = [1, 1]} : vector<16x192xf32> to vector<16x8xf32>
    %251 = vector.extract_strided_slice %190 {offsets = [0, 56], sizes = [16, 8], strides = [1, 1]} : vector<16x192xf32> to vector<16x8xf32>
    %252 = vector.extract_strided_slice %190 {offsets = [0, 160], sizes = [16, 32], strides = [1, 1]} : vector<16x192xf32> to vector<16x32xf32>
    %cst_85 = arith.constant dense<0.000000e+00> : vector<16x16xf32>
    %253 = tpu.matmul %250, %251, %cst_85 {dimension_numbers = #tpu.dot_dimension_numbers<[1], [1], [0], [0], [0, 0, 1, 0], [], []>} : vector<16x8xf32>, vector<16x8xf32>, vector<16x16xf32> -> vector<16x16xf32>
    %cst_86 = arith.constant 0.353553385 : f32
    %254 = vector.broadcast %cst_86 : f32 to vector<16x16xf32>
    %255 = arith.mulf %253, %254 : vector<16x16xf32>
    %256 = arith.addf %255, %0 : vector<16x16xf32>
    %cst_87 = arith.constant dense<0xFF800000> : vector<16xf32>
    %257 = vector.multi_reduction <maximumf>, %256, %cst_87 [1] : vector<16x16xf32> to vector<16xf32>
    %258 = vector.shape_cast %257 : vector<16xf32> to vector<16x1xf32>
    %259 = vector.broadcast %258 : vector<16x1xf32> to vector<16x16xf32>
    %260 = arith.subf %256, %259 : vector<16x16xf32>
    %261 = math.exp %260 : vector<16x16xf32>
    %cst_88 = arith.constant dense<0.000000e+00> : vector<16xf32>
    %262 = vector.multi_reduction <add>, %261, %cst_88 [1] : vector<16x16xf32> to vector<16xf32>
    %263 = vector.shape_cast %262 : vector<16xf32> to vector<16x1xf32>
    %264 = tpu.reciprocal %263 {approx = true} : vector<16x1xf32> -> vector<16x1xf32>
    %265 = vector.broadcast %264 : vector<16x1xf32> to vector<16x16xf32>
    %266 = arith.mulf %261, %265 : vector<16x16xf32>
    %cst_89 = arith.constant dense<0.000000e+00> : vector<16x32xf32>
    %267 = tpu.matmul %266, %252, %cst_89 {dimension_numbers = #tpu.dot_dimension_numbers<[1], [0], [0], [1], [0, 0, 1, 1], [], []>} : vector<16x16xf32>, vector<16x32xf32>, vector<16x32xf32> -> vector<16x32xf32>
    %268 = arith.addf %249, %267 : vector<16x32xf32>
    %269 = arith.addf %184, %268 : vector<16x32xf32>
    %c4 = arith.constant 4 : index
    %c0_90 = arith.constant 0 : index
    %270 = vector.load %arg6[%c4, %c0_90] : memref<5x256xf32, #tpu.memory_space<vmem>>, vector<1x32xf32>
    %c4_91 = arith.constant 4 : index
    %c32_92 = arith.constant 32 : index
    %271 = vector.load %arg6[%c4_91, %c32_92] : memref<5x256xf32, #tpu.memory_space<vmem>>, vector<1x32xf32>
    %cst_93 = arith.constant dense<0.000000e+00> : vector<16xf32>
    %272 = vector.multi_reduction <add>, %269, %cst_93 [1] : vector<16x32xf32> to vector<16xf32>
    %273 = vector.shape_cast %272 : vector<16xf32> to vector<16x1xf32>
    %cst_94 = arith.constant 3.200000e+01 : f32
    %274 = vector.broadcast %cst_94 : f32 to vector<16x1xf32>
    %275 = arith.divf %273, %274 : vector<16x1xf32>
    %276 = vector.broadcast %275 : vector<16x1xf32> to vector<16x32xf32>
    %277 = arith.subf %269, %276 : vector<16x32xf32>
    %278 = arith.mulf %277, %277 : vector<16x32xf32>
    %cst_95 = arith.constant dense<0.000000e+00> : vector<16xf32>
    %279 = vector.multi_reduction <add>, %278, %cst_95 [1] : vector<16x32xf32> to vector<16xf32>
    %280 = vector.shape_cast %279 : vector<16xf32> to vector<16x1xf32>
    %cst_96 = arith.constant 3.200000e+01 : f32
    %281 = vector.broadcast %cst_96 : f32 to vector<16x1xf32>
    %282 = arith.divf %280, %281 : vector<16x1xf32>
    %283 = vector.broadcast %275 : vector<16x1xf32> to vector<16x32xf32>
    %284 = arith.subf %269, %283 : vector<16x32xf32>
    %cst_97 = arith.constant 9.99999996E-13 : f32
    %285 = vector.broadcast %cst_97 : f32 to vector<16x1xf32>
    %286 = arith.addf %282, %285 : vector<16x1xf32>
    %287 = math.rsqrt %286 : vector<16x1xf32>
    %288 = vector.broadcast %287 : vector<16x1xf32> to vector<16x32xf32>
    %289 = arith.mulf %284, %288 : vector<16x32xf32>
    %290 = vector.broadcast %270 : vector<1x32xf32> to vector<16x32xf32>
    %291 = arith.mulf %289, %290 : vector<16x32xf32>
    %292 = vector.broadcast %271 : vector<1x32xf32> to vector<16x32xf32>
    %293 = arith.addf %291, %292 : vector<16x32xf32>
    %c1_98 = arith.constant 1 : index
    %c0_99 = arith.constant 0 : index
    %c0_100 = arith.constant 0 : index
    %294 = vector.load %arg4[%c1_98, %c0_99, %c0_100] : memref<2x96x64xf32, #tpu.memory_space<vmem>>, vector<1x96x64xf32>
    %295 = vector.shape_cast %294 : vector<1x96x64xf32> to vector<96x64xf32>
    %296 = vector.extract_strided_slice %295 {offsets = [0, 0], sizes = [32, 64], strides = [1, 1]} : vector<96x64xf32> to vector<32x64xf32>
    %cst_101 = arith.constant dense<0.000000e+00> : vector<16x64xf32>
    %297 = tpu.matmul %293, %296, %cst_101 {dimension_numbers = #tpu.dot_dimension_numbers<[1], [0], [0], [1], [0, 0, 1, 1], [], []>} : vector<16x32xf32>, vector<32x64xf32>, vector<16x64xf32> -> vector<16x64xf32>
    %c4_102 = arith.constant 4 : index
    %c64_103 = arith.constant 64 : index
    %298 = vector.load %arg6[%c4_102, %c64_103] : memref<5x256xf32, #tpu.memory_space<vmem>>, vector<1x64xf32>
    %299 = vector.broadcast %298 : vector<1x64xf32> to vector<16x64xf32>
    %300 = arith.addf %297, %299 : vector<16x64xf32>
    %301 = arith.mulf %300, %300 : vector<16x64xf32>
    %302 = arith.mulf %300, %301 : vector<16x64xf32>
    %cst_104 = arith.constant 4.471500e-02 : f32
    %303 = vector.broadcast %cst_104 : f32 to vector<16x64xf32>
    %304 = arith.mulf %303, %302 : vector<16x64xf32>
    %305 = arith.addf %300, %304 : vector<16x64xf32>
    %cst_105 = arith.constant 0.797884583 : f32
    %306 = vector.broadcast %cst_105 : f32 to vector<16x64xf32>
    %307 = arith.mulf %306, %305 : vector<16x64xf32>
    %308 = math.tanh %307 : vector<16x64xf32>
    %cst_106 = arith.constant 1.000000e+00 : f32
    %309 = vector.broadcast %cst_106 : f32 to vector<16x64xf32>
    %310 = arith.addf %309, %308 : vector<16x64xf32>
    %cst_107 = arith.constant 5.000000e-01 : f32
    %311 = vector.broadcast %cst_107 : f32 to vector<16x64xf32>
    %312 = arith.mulf %311, %310 : vector<16x64xf32>
    %313 = arith.mulf %300, %312 : vector<16x64xf32>
    %314 = vector.extract_strided_slice %295 {offsets = [32, 0], sizes = [64, 32], strides = [1, 1]} : vector<96x64xf32> to vector<64x32xf32>
    %cst_108 = arith.constant dense<0.000000e+00> : vector<16x32xf32>
    %315 = tpu.matmul %313, %314, %cst_108 {dimension_numbers = #tpu.dot_dimension_numbers<[1], [0], [0], [1], [0, 0, 1, 1], [], []>} : vector<16x64xf32>, vector<64x32xf32>, vector<16x32xf32> -> vector<16x32xf32>
    %c4_109 = arith.constant 4 : index
    %c128_110 = arith.constant 128 : index
    %316 = vector.load %arg6[%c4_109, %c128_110] : memref<5x256xf32, #tpu.memory_space<vmem>>, vector<1x32xf32>
    %317 = vector.broadcast %316 : vector<1x32xf32> to vector<16x32xf32>
    %318 = arith.addf %315, %317 : vector<16x32xf32>
    %319 = arith.addf %293, %318 : vector<16x32xf32>
    %c4_111 = arith.constant 4 : index
    %c160_112 = arith.constant 160 : index
    %320 = vector.load %arg6[%c4_111, %c160_112] : memref<5x256xf32, #tpu.memory_space<vmem>>, vector<1x32xf32>
    %c4_113 = arith.constant 4 : index
    %c192_114 = arith.constant 192 : index
    %321 = vector.load %arg6[%c4_113, %c192_114] : memref<5x256xf32, #tpu.memory_space<vmem>>, vector<1x32xf32>
    %cst_115 = arith.constant dense<0.000000e+00> : vector<16xf32>
    %322 = vector.multi_reduction <add>, %319, %cst_115 [1] : vector<16x32xf32> to vector<16xf32>
    %323 = vector.shape_cast %322 : vector<16xf32> to vector<16x1xf32>
    %cst_116 = arith.constant 3.200000e+01 : f32
    %324 = vector.broadcast %cst_116 : f32 to vector<16x1xf32>
    %325 = arith.divf %323, %324 : vector<16x1xf32>
    %326 = vector.broadcast %325 : vector<16x1xf32> to vector<16x32xf32>
    %327 = arith.subf %319, %326 : vector<16x32xf32>
    %328 = arith.mulf %327, %327 : vector<16x32xf32>
    %cst_117 = arith.constant dense<0.000000e+00> : vector<16xf32>
    %329 = vector.multi_reduction <add>, %328, %cst_117 [1] : vector<16x32xf32> to vector<16xf32>
    %330 = vector.shape_cast %329 : vector<16xf32> to vector<16x1xf32>
    %cst_118 = arith.constant 3.200000e+01 : f32
    %331 = vector.broadcast %cst_118 : f32 to vector<16x1xf32>
    %332 = arith.divf %330, %331 : vector<16x1xf32>
    %333 = vector.broadcast %325 : vector<16x1xf32> to vector<16x32xf32>
    %334 = arith.subf %319, %333 : vector<16x32xf32>
    %cst_119 = arith.constant 9.99999996E-13 : f32
    %335 = vector.broadcast %cst_119 : f32 to vector<16x1xf32>
    %336 = arith.addf %332, %335 : vector<16x1xf32>
    %337 = math.rsqrt %336 : vector<16x1xf32>
    %338 = vector.broadcast %337 : vector<16x1xf32> to vector<16x32xf32>
    %339 = arith.mulf %334, %338 : vector<16x32xf32>
    %340 = vector.broadcast %320 : vector<1x32xf32> to vector<16x32xf32>
    %341 = arith.mulf %339, %340 : vector<16x32xf32>
    %342 = vector.broadcast %321 : vector<1x32xf32> to vector<16x32xf32>
    %343 = arith.addf %341, %342 : vector<16x32xf32>
    %344 = vector.extract_strided_slice %343 {offsets = [0, 0], sizes = [1, 32], strides = [1, 1]} : vector<16x32xf32> to vector<1x32xf32>
    %345 = vector.extract_strided_slice %343 {offsets = [8, 0], sizes = [1, 32], strides = [1, 1]} : vector<16x32xf32> to vector<1x32xf32>
    %346 = tpu.concatenate %344, %345 in 0 : vector<1x32xf32>, vector<1x32xf32> -> vector<2x32xf32>
    %c0_120 = arith.constant 0 : index
    %c128_121 = arith.constant 128 : index
    %347 = vector.load %arg5[%c0_120, %c128_121] : memref<32x160xf32, #tpu.memory_space<vmem>>, vector<32x32xf32>
    %cst_122 = arith.constant dense<0.000000e+00> : vector<2x32xf32>
    %348 = tpu.matmul %346, %347, %cst_122 {dimension_numbers = #tpu.dot_dimension_numbers<[1], [0], [0], [1], [0, 0, 1, 1], [], []>} : vector<2x32xf32>, vector<32x32xf32>, vector<2x32xf32> -> vector<2x32xf32>
    %c0_123 = arith.constant 0 : index
    %c64_124 = arith.constant 64 : index
    %349 = vector.load %arg6[%c0_123, %c64_124] : memref<5x256xf32, #tpu.memory_space<vmem>>, vector<1x32xf32>
    %350 = vector.broadcast %349 : vector<1x32xf32> to vector<2x32xf32>
    %351 = arith.addf %348, %350 : vector<2x32xf32>
    %352 = math.tanh %351 : vector<2x32xf32>
    %c0_125 = arith.constant 0 : index
    %c0_126 = arith.constant 0 : index
    %353 = vector.load %arg5[%c0_125, %c0_126] : memref<32x160xf32, #tpu.memory_space<vmem>>, vector<32x128xf32>
    %cst_127 = arith.constant dense<0.000000e+00> : vector<2x128xf32>
    %354 = tpu.matmul %352, %353, %cst_127 {dimension_numbers = #tpu.dot_dimension_numbers<[1], [0], [0], [1], [0, 0, 1, 1], [], []>} : vector<2x32xf32>, vector<32x128xf32>, vector<2x128xf32> -> vector<2x128xf32>
    %c0_128 = arith.constant 0 : index
    %c128_129 = arith.constant 128 : index
    %355 = vector.load %arg6[%c0_128, %c128_129] : memref<5x256xf32, #tpu.memory_space<vmem>>, vector<1x128xf32>
    %356 = vector.broadcast %355 : vector<1x128xf32> to vector<2x128xf32>
    %357 = arith.addf %354, %356 : vector<2x128xf32>
    %c0_130 = arith.constant 0 : index
    %c0_131 = arith.constant 0 : index
    %358 = vector.load %arg7[%c0_130, %c0_131] : memref<2x128xf32, #tpu.memory_space<vmem>>, vector<2x128xf32>
    tpu.vector_store %arg7[%c0_130, %c0_131], %357 {strides = array<i32>} : memref<2x128xf32, #tpu.memory_space<vmem>>, vector<2x128xf32>,
    return
  }
  func.func @transform_0(%arg0: i32) -> (i32, i32) {
    %c0_i32 = arith.constant 0 : i32
    %c0_i32_0 = arith.constant 0 : i32
    %c0_i32_1 = arith.constant 0 : i32
    return %c0_i32, %c0_i32_0 : i32, i32
  }
  func.func @transform_1(%arg0: i32) -> (i32, i32) {
    %c0_i32 = arith.constant 0 : i32
    %c0_i32_0 = arith.constant 0 : i32
    %c0_i32_1 = arith.constant 0 : i32
    return %c0_i32, %c0_i32_0 : i32, i32
  }
  func.func @transform_2(%arg0: i32) -> (i32, i32, i32) {
    %c0_i32 = arith.constant 0 : i32
    %c0_i32_0 = arith.constant 0 : i32
    %c0_i32_1 = arith.constant 0 : i32
    %c0_i32_2 = arith.constant 0 : i32
    return %c0_i32, %c0_i32_0, %c0_i32_1 : i32, i32, i32
  }
  func.func @transform_3(%arg0: i32) -> (i32, i32, i32) {
    %c0_i32 = arith.constant 0 : i32
    %c0_i32_0 = arith.constant 0 : i32
    %c0_i32_1 = arith.constant 0 : i32
    %c0_i32_2 = arith.constant 0 : i32
    return %c0_i32, %c0_i32_0, %c0_i32_1 : i32, i32, i32
  }
  func.func @transform_4(%arg0: i32) -> (i32, i32) {
    %c0_i32 = arith.constant 0 : i32
    %c0_i32_0 = arith.constant 0 : i32
    %c0_i32_1 = arith.constant 0 : i32
    return %c0_i32, %c0_i32_0 : i32, i32
  }
  func.func @transform_5(%arg0: i32) -> (i32, i32) {
    %c0_i32 = arith.constant 0 : i32
    %c0_i32_0 = arith.constant 0 : i32
    %c0_i32_1 = arith.constant 0 : i32
    return %c0_i32, %c0_i32_0 : i32, i32
  }
  func.func @transform_6(%arg0: i32) -> (i32, i32) {
    %c0_i32 = arith.constant 0 : i32
    %c0_i32_0 = arith.constant 0 : i32
    %c0_i32_1 = arith.constant 0 : i32
    return %c0_i32, %c0_i32_0 : i32, i32
  }
}

</mosaic_0001>

<bundles_post_ra>
// kernel: mul.8
= control target key start
LH: loop header
LB: loop body
LE: loop exit
PB: predicated region body
PF: predicated region fallthrough
CT: control target
= control target key end

     0   :  { %vm7_vm0 = vcmask 64512   ;;  %vm13_vm1 = vcmask 130112   ;;  %s39_s0 = inlined_call_operand.vmem [shape: f32[2,8], index: 0, kind: input, shape index: {}]   ;;  %s40_s1 = inlined_call_operand.vmem [shape: f32[16], index: 1, kind: output, shape index: {}]  }
   0x1   :  { %v4_v0 = vld [vmem:[%s39_s0] sm:$0x3]  ;;  %s22_s0 = smov 8  }
   0x2   :  { %5 = vst [vmem:[#allocation1] sm:$0x3] %v4_v0 }
   0x9   :  { %v10_v1 = vld [vmem:[#allocation1 + $0x1] sm:$0x1]   ;;  %v6_v2 = vld [vmem:[#allocation1] sm:$0x1]  }
   0xa   :  { %11 = vrot.lane.b32.xlu0 %v10_v1, %s22_s0  ;;  %8 = vst.msk [vmem:[#allocation0] sm:$0x1] %vm7_vm0, %v6_v2  }
  0x7c   :  { %v12_v3 = vpop.permute.xlu0 %11  }
  0x7d   :  { %14 = vst.msk [vmem:[#allocation0] sm:$0x1] %vm13_vm1, %v12_v3  }
  0x84   :  { %v18_v4 = vld [vmem:[#allocation0] sm:$0x1] }
  0x85   :  { %20 = vst [vmem:[%s40_s1] sm:$0x1] %v18_v4 }

// kernel: sentiment_classifier_forward.1
= control target key start
LH: loop header
LB: loop body
LE: loop exit
PB: predicated region body
PF: predicated region fallthrough
CT: control target
= control target key end

     0   :  { %vm29_vm0 = vcmask 261120   ;;  %s4048_s0 = inlined_call_operand.vmem [shape: f32[16,32], index: 0, kind: input, shape index: {}]   ;;  %s4049_s1 = inlined_call_operand.vmem [shape: f32[16,16], index: 1, kind: input, shape index: {}]   ;;  %s4050_s2 = inlined_call_operand.vmem [shape: f32[2,32,192], index: 2, kind: input, shape index: {}]   ;;  %s4051_s3 = inlined_call_operand.vmem [shape: f32[2,96,64], index: 3, kind: input, shape index: {}]   ;;  %s4052_s4 = inlined_call_operand.vmem [shape: f32[32,160], index: 4, kind: input, shape index: {}]   ;;  %s4053_s5 = inlined_call_operand.vmem [shape: f32[5,256], index: 5, kind: input, shape index: {}]   ;;  %s4054_s6 = inlined_call_operand.hbm [shape: f32[2,128], index: 6, kind: output, shape index: {}]  }
   0x1   :  { %v26_v0 = vld [vmem:[%s4048_s0] sm:$0xff]  ;;  %v27_v1 = vld [vmem:[%s4048_s0 + $0x8] sm:$0xff] }
   0x2   :  { %11 = vsyncpa [#allocation3], 0  ;;  %v30_v2 = vsel %vm29_vm0, %v26_v0, 0.0  ;;  %v33_v3 = vsel %vm29_vm0, %v27_v1, 0.0  ;;  %v28_v4 = vld [vmem:[%s4053_s5] ss:$0 sm:$0xff]  ;;  %v76_v43 = vlaneseq }
   0x3   :  { %31 = vadd.xlane.f32.xlu0 %v30_v2  ;;  %s3463_s27 = smov 96   ;;  %v66_v15 = vld [vmem:[%s4050_s2 + $0x8] sm:$0xff]  ;;  %v68_v16 = vld [vmem:[%s4050_s2 + $0x18] sm:$0xff]  ;;  %v65_v17 = vld [vmem:[%s4050_s2] sm:$0xff]  ;;  %v3464_v27 = vmov 0.0   ;;  %vm176_vm1 = vcmask 64512  }
   0x4   :  { %v3103_v18 = vpack.c.bf16 %v68_v16, %v66_v15  ;;  %v67_v19 = vld [vmem:[%s4050_s2 + $0x10] sm:$0xff]  ;;  %v70_v20 = vld [vmem:[%s4050_s2 + $0x28] sm:$0xff]  ;;  %v72_v21 = vld [vmem:[%s4050_s2 + $0x38] sm:$0xff]  ;;  %156 = vmatprep.mubr.f32.mxu0 %v3464_v27  ;;  %v3559_v44 = vshrl.u32 %v76_v43, 7  ;;  %s3465_s21 = smov 80   ;;  %s3466_s22 = smov 112  }
   0x5   :  { %v3105_v22 = vpack.c.bf16 %v67_v19, %v65_v17  ;;  %v3107_v23 = vpack.c.bf16 %v72_v21, %v70_v20  ;;  %v69_v24 = vld [vmem:[%s4050_s2 + $0x20] sm:$0xff]  ;;  %v71_v25 = vld [vmem:[%s4050_s2 + $0x30] sm:$0xff]  ;;  %s3467_s23 = smov 88   ;;  %s3468_s24 = smov 120   ;;  %vm3606_vm2 = vmpackc.low %vm176_vm1, %vm176_vm1  ;;  %vm264_vm3 = vcmask 130048   ;;  %vm1182_vm4 = vcmask 523264  }
   0x6   :  { %3104 = vmatprep.subr.bf16.mxu0 %v3103_v18  ;;  %v3109_v26 = vpack.c.bf16 %v71_v25, %v69_v24  ;;  %v78_v45 = vsub.s32 0, %v3559_v44  ;;  %v2719_v46 = vld [vmem:[%s4053_s5 + $0x1] ss:$8 sm:$0x3]  ;;  %v82_v48 = vsub.s32 1, %v3559_v44  ;;  %s3469_s29 = smov 32  }
   0x7   :  { %34 = vadd.xlane.f32.xlu0 %v33_v3  ;;  %3106 = vmatpush1.bf16.msra.mxu0 %v3105_v22  ;;  %v3631_v15 = vld [vmem:[%s4049_s1 + $0x8] sm:$0xff]  ;;  %v3636_v18 = vld [vmem:[%s4049_s1] sm:$0xff]  ;;  %s3470_s30 = smov 72   ;;  %s3471_s7 = smov 64   ;;  %vm3474_vm5 = vmmov 0   ;;  %vm2543_vm6 = vcmask 1040384  }
   0x8   :  { %3108 = vmatprep.subr.bf16.mxu0 %v3107_v23  ;;  %v79_v47 = vrot.slane %v2719_v46, %v78_v45  ;;  %v83_v52 = vrot.slane %v2719_v46, %v82_v48  ;;  %s3472_s8 = smov 104  }
   0xb   :  { %3110 = vmatpush1.bf16.msra.mxu0 %v3109_v26 }
  0x1d   :  { %60 = vrot.lane.b32.xlu0 %v28_v4, %s3463_s27 }
  0x90   :  { %v32_v5 = vpop.xlane.xlu0 %31 }
  0x91   :  { %v37_v6 = vmul.f32 0.03125, %v32_v5 }
  0x93   :  { %v39_v7 = vsub.f32 %v26_v0, %v37_v6 }
  0x94   :  { %v35_v8 = vpop.xlane.xlu0 %34 }
  0x95   :  { %v38_v9 = vmul.f32 0.03125, %v35_v8  ;;  %v41_v10 = vmul.f32 %v39_v7, %v39_v7 }
  0x97   :  { %v40_v11 = vsub.f32 %v27_v1, %v38_v9  ;;  %v43_v12 = vsel %vm29_vm0, %v41_v10, 0.0 }
  0x98   :  { %44 = vadd.xlane.f32.xlu1 %v43_v12  ;;  %v61_v36 = vpop.permute.xlu0 %60 }
  0x99   :  { %v42_v13 = vmul.f32 %v40_v11, %v40_v11 }
  0x9b   :  { %v46_v14 = vsel %vm29_vm0, %v42_v13, 0.0 }
  0x9c   :  { %47 = vadd.xlane.f32.xlu1 %v46_v14 }
 0x125   :  { %v45_v28 = vpop.xlane.xlu1 %44 }
 0x126   :  { %v49_v29 = vmul.f32 0.03125, %v45_v28 }
 0x128   :  { %v51_v30 = vadd.f32 1e-12, %v49_v29 }
 0x129   :  { %v48_v31 = vpop.xlane.xlu1 %47 }
 0x12a   :  { %3342 = vrsqrt.f32 %v51_v30  ;;  %v50_v32 = vmul.f32 0.03125, %v48_v31 }
 0x12c   :  { %v52_v33 = vadd.f32 1e-12, %v50_v32 }
 0x12e   :  { %3344 = vrsqrt.f32 %v52_v33 }
 0x134   :  { %v3343_v34 = vpop.eup %3342 }
 0x135   :  { %v55_v35 = vmul.f32 %v3343_v34, %v39_v7 }
 0x137   :  { %v57_v37 = vmul.f32 %v55_v35, %v28_v4 }
 0x138   :  { %v3345_v38 = vpop.eup %3344 }
 0x139   :  { %v56_v39 = vmul.f32 %v3345_v38, %v40_v11  ;;  %v3550_v40 = vadd.f32 %v61_v36, %v57_v37 }
 0x13b   :  { %v58_v41 = vmul.f32 %v56_v39, %v28_v4  ;;  %2720 = vmatmul.mubr.msk.f32.vlgmr.msra.gmra.mrb[0].mxu0 %vm29_vm0, %v3550_v40 }
 0x13c   :  { %162 = vmatprep.mubr.f32.mxu0 %v3464_v27 }
 0x13d   :  { %v3555_v42 = vadd.f32 %v61_v36, %v58_v41 }
 0x13f   :  { %2721 = vmatmul.mubr.msk.f32.gmra.mrb[2].mxu0 %vm29_vm0, %v3555_v42 }
 0x20e   :  { %v158_v49 = vpop.f32.mrb[0].mxu0 }
 0x20f   :  { %v3568_v50 = vadd.f32 %v158_v49, %v79_v47  ;;  %v160_v51 = vpop.f32.mrb[1].mxu0 }
 0x210   :  { %v3576_v56 = vadd.f32 %v160_v51, %v83_v52 }
 0x211   :  { %2913 = vmatprep.mubr.msk.f32.mxu1 %vm176_vm1, %v3568_v50 }
 0x212   :  { %v164_v53 = vpop.f32.mrb[2].mxu0 }
 0x213   :  { %v3574_v54 = vadd.f32 %v164_v53, %v79_v47  ;;  %v166_v55 = vpop.f32.mrb[3].mxu0 }
 0x214   :  { %v3578_v57 = vadd.f32 %v166_v55, %v83_v52 }
 0x215   :  { %v3582_v58 = vpack.i.bf16 %v3574_v54, %v3568_v50 }
 0x216   :  { %v3302_v59 = vpack.i.bf16 %v3578_v57, %v3576_v56  ;;  %v3588_v60 = vpack.c.bf16 %v3578_v57, %v3576_v56 }
 0x217   :  { %3283 = vrot.lane.b32.xlu0 %v3582_v58, %s3465_s21  ;;  %3273 = vrot.lane.b32.xlu1 %v3582_v58, %s3463_s27 }
 0x21b   :  { %598 = vrot.lane.b32.xlu0 %v3568_v50, %s3466_s22  ;;  %3278 = vrot.lane.b32.xlu1 %v3582_v58, %s3467_s23 }
 0x21f   :  { %384 = vrot.lane.b32.xlu1 %v3568_v50, %s3468_s24 }
 0x223   :  { %386 = vrot.lane.b32.xlu1 %v3574_v54, %s3468_s24 }
 0x227   :  { %600 = vrot.lane.b32.xlu1 %v3574_v54, %s3466_s22 }
 0x289   :  { %v3274_v61 = vpop.permute.xlu1 %3273  ;;  %v3284_v0 = vpop.permute.xlu0 %3283 }
 0x28a   :  { %v3276_v62 = vunpack.i.h.bf16 %v3274_v61  ;;  %v3275_v63 = vunpack.i.l.bf16 %v3274_v61  ;;  %v3286_v4 = vunpack.i.h.bf16 %v3284_v0  ;;  %v3285_v5 = vunpack.i.l.bf16 %v3284_v0 }
 0x28c   :  { %v3111_v2 = vpack.c.bf16 %v3276_v62, %v3275_v63  ;;  %v3131_v10 = vpack.c.bf16 %v3286_v4, %v3285_v5 }
 0x28d   :  { %v3279_v3 = vpop.permute.xlu1 %3278  ;;  %v599_v12 = vpop.permute.xlu0 %598 }
 0x28e   :  { %v3281_v6 = vunpack.i.h.bf16 %v3279_v3  ;;  %v3280_v7 = vunpack.i.l.bf16 %v3279_v3  ;;  %3113 = vmatprep.subr.msk.bf16.mxu1 %vm3606_vm2, %v3111_v2 }
 0x28f   :  { %3116 = vmatpush3.bf16.xpose.msk.msra.mxu1 %vm3606_vm2, %v3111_v2 }
 0x290   :  { %v3121_v8 = vpack.c.bf16 %v3281_v6, %v3280_v7 }
 0x291   :  { %v385_v9 = vpop.permute.xlu1 %384 }
 0x292   :  { %3123 = vmatprep.subr.msk.bf16.mxu0 %vm3606_vm2, %v3121_v8  ;;  %2927 = vmatprep.mubr.msk.f32.mxu0 %vm176_vm1, %v385_v9 }
 0x293   :  { %3126 = vmatpush3.bf16.xpose.msk.msra.mxu0 %vm3606_vm2, %v3121_v8 }
 0x294   :  { %3133 = vmatprep.subr.msk.bf16.mxu0 %vm3606_vm2, %v3131_v10 }
 0x295   :  { %v387_v11 = vpop.permute.xlu1 %386 }
 0x296   :  { %2914 = vmatmul.mubr.msk.f32.vlgmr.msra.gmra.mrb[0].mxu1 %vm176_vm1, %v3574_v54 }
 0x299   :  { %v601_v13 = vpop.permute.xlu1 %600 }
 0x29a   :  { %2928 = vmatmul.mubr.msk.f32.vlgmr.msra.gmra.mrb[4].mxu0 %vm176_vm1, %v387_v11 }
 0x29b   :  { %3136 = vmatpush3.bf16.xpose.msk.msra.mxu0 %vm3606_vm2, %v3131_v10  ;;  %2941 = vmatprep.mubr.msk.f32.mxu0 %vm176_vm1, %v599_v12 }
 0x2a2   :  { %2942 = vmatmul.mubr.msk.f32.vlgmr.msra.gmra.mrb[6].mxu0 %vm176_vm1, %v601_v13 }
 0x369   :  { %v2915_v14 = vpop.f32.mrb[0].mxu1 }
 0x36a   :  { %v261_v16 = vmul.f32 0.35355338, %v2915_v14  ;;  %v251_v17 = vpop.f32.mrb[1].mxu1 }
 0x36b   :  { %v260_v19 = vmul.f32 0.35355338, %v251_v17 }
 0x36c   :  { %v263_v20 = vadd.f32 %v261_v16, %v3631_v15 }
 0x36d   :  { %v2929_v21 = vpop.f32.mrb[4].mxu0  ;;  %v262_v22 = vadd.f32 %v260_v19, %v3636_v18 }
 0x36e   :  { %v466_v23 = vpop.f32.mrb[5].mxu0  ;;  %v268_v24 = vsel %vm264_vm3, %v263_v20, -inf  ;;  %v476_v25 = vmul.f32 0.35355338, %v2929_v21 }
 0x36f   :  { %v475_v26 = vmul.f32 0.35355338, %v466_v23  ;;  %269 = vmax.xlane.f32.xlu1 %v268_v24  ;;  %v265_v28 = vsel %vm264_vm3, %v262_v22, -inf }
 0x370   :  { %266 = vmax.xlane.f32.xlu0 %v265_v28  ;;  %v478_v31 = vadd.f32 %v476_v25, %v3631_v15 }
 0x371   :  { %v477_v29 = vadd.f32 %v475_v26, %v3636_v18 }
 0x372   :  { %v482_v36 = vsel %vm264_vm3, %v478_v31, -inf }
 0x373   :  { %v479_v30 = vsel %vm264_vm3, %v477_v29, -inf }
 0x374   :  { %480 = vmax.xlane.f32.xlu0 %v479_v30 }
 0x375   :  { %v2943_v32 = vpop.f32.mrb[6].mxu0 }
 0x376   :  { %v690_v33 = vmul.f32 0.35355338, %v2943_v32  ;;  %v680_v34 = vpop.f32.mrb[7].mxu0 }
 0x377   :  { %v689_v35 = vmul.f32 0.35355338, %v680_v34 }
 0x378   :  { %483 = vmax.xlane.f32.xlu0 %v482_v36  ;;  %v692_v37 = vadd.f32 %v690_v33, %v3631_v15 }
 0x379   :  { %v691_v38 = vadd.f32 %v689_v35, %v3636_v18 }
 0x37a   :  { %v696_v39 = vsel %vm264_vm3, %v692_v37, -inf }
 0x37b   :  { %697 = vmax.xlane.f32.xlu1 %v696_v39  ;;  %v693_v41 = vsel %vm264_vm3, %v691_v38, -inf }
 0x37c   :  { %694 = vmax.xlane.f32.xlu0 %v693_v41 }
 0x3fc   :  { %v270_v43 = vpop.xlane.xlu1 %269 }
 0x3fd   :  { %v272_v46 = vsub.f32 %v263_v20, %v270_v43  ;;  %v267_v47 = vpop.xlane.xlu0 %266 }
 0x3fe   :  { %v271_v49 = vsub.f32 %v262_v22, %v267_v47 }
 0x3ff   :  { %v275_v51 = vmul.f32 1.442695, %v272_v46 }
 0x400   :  { %v273_v52 = vmul.f32 1.442695, %v271_v49 }
 0x401   :  { %3346 = vpow2.f32 %v275_v51  ;;  %v481_v53 = vpop.xlane.xlu0 %480 }
 0x402   :  { %3348 = vpow2.f32 %v273_v52  ;;  %v485_v55 = vsub.f32 %v477_v29, %v481_v53 }
 0x404   :  { %v487_v61 = vmul.f32 1.442695, %v485_v55 }
 0x405   :  { %v484_v62 = vpop.xlane.xlu0 %483 }
 0x406   :  { %3350 = vpow2.f32 %v487_v61  ;;  %v486_v63 = vsub.f32 %v478_v31, %v484_v62 }
 0x408   :  { %v489_v0 = vmul.f32 1.442695, %v486_v63  ;;  %v698_v2 = vpop.xlane.xlu1 %697 }
 0x409   :  { %v700_v3 = vsub.f32 %v692_v37, %v698_v2  ;;  %v695_v4 = vpop.xlane.xlu0 %694 }
 0x40a   :  { %3352 = vpow2.f32 %v489_v0  ;;  %v699_v5 = vsub.f32 %v691_v38, %v695_v4 }
 0x40b   :  { %v3347_v6 = vpop.eup %3346  ;;  %v703_v7 = vmul.f32 1.442695, %v700_v3 }
 0x40c   :  { %v3349_v8 = vpop.eup %3348  ;;  %v701_v9 = vmul.f32 1.442695, %v699_v5  ;;  %v280_v10 = vsel %vm264_vm3, %v3347_v6, 0.0 }
 0x40d   :  { %3354 = vpow2.f32 %v703_v7  ;;  %281 = vadd.xlane.f32.xlu1 %v280_v10  ;;  %v277_v11 = vsel %vm264_vm3, %v3349_v8, 0.0 }
 0x40e   :  { %3356 = vpow2.f32 %v701_v9  ;;  %278 = vadd.xlane.f32.xlu0 %v277_v11 }
 0x410   :  { %v3351_v12 = vpop.eup %3350 }
 0x411   :  { %v491_v13 = vsel %vm264_vm3, %v3351_v12, 0.0 }
 0x412   :  { %492 = vadd.xlane.f32.xlu0 %v491_v13 }
 0x414   :  { %v3353_v14 = vpop.eup %3352 }
 0x415   :  { %v494_v16 = vsel %vm264_vm3, %v3353_v14, 0.0 }
 0x416   :  { %495 = vadd.xlane.f32.xlu1 %v494_v16 }
 0x417   :  { %v3355_v17 = vpop.eup %3354 }
 0x418   :  { %v3357_v19 = vpop.eup %3356  ;;  %v708_v20 = vsel %vm264_vm3, %v3355_v17, 0.0 }
 0x419   :  { %v705_v21 = vsel %vm264_vm3, %v3357_v19, 0.0 }
 0x41a   :  { %709 = vadd.xlane.f32.xlu1 %v708_v20  ;;  %706 = vadd.xlane.f32.xlu0 %v705_v21 }
 0x42b   :  { %3293 = vrot.lane.b32.xlu1 %v3582_v58, %s3469_s29 }
 0x42f   :  { %3298 = vrot.lane.b32.xlu1 %v3582_v58, %s3470_s30 }
 0x430   :  { %3288 = vrot.lane.b32.xlu0 %v3582_v58, %s3471_s7 }
 0x433   :  { %806 = vrot.lane.b32.xlu1 %v3568_v50, %s3472_s8 }
 0x434   :  { %808 = vrot.lane.b32.xlu0 %v3574_v54, %s3472_s8 }
 0x49a   :  { %v282_v23 = vpop.xlane.xlu1 %281 }
 0x49b   :  { %v279_v22 = vpop.xlane.xlu0 %278 }
 0x49c   :  { %3358 = vrcp.f32 %v279_v22 }
 0x49d   :  { %3360 = vrcp.f32 %v282_v23 }
 0x49f   :  { %v493_v24 = vpop.xlane.xlu0 %492 }
 0x4a0   :  { %3362 = vrcp.f32 %v493_v24 }
 0x4a3   :  { %v496_v25 = vpop.xlane.xlu1 %495 }
 0x4a4   :  { %3364 = vrcp.f32 %v496_v25 }
 0x4a6   :  { %v3359_v26 = vpop.eup %3358 }
 0x4a7   :  { %v710_v28 = vpop.xlane.xlu1 %709  ;;  %v707_v29 = vpop.xlane.xlu0 %706  ;;  %v285_v30 = vmul.f32 %v3359_v26, %v3349_v8 }
 0x4a8   :  { %3366 = vrcp.f32 %v707_v29  ;;  %v3361_v35 = vpop.eup %3360 }
 0x4a9   :  { %2920 = vmatprep.mubr.msk.f32.mxu1 %vm264_vm3, %v285_v30  ;;  %3368 = vrcp.f32 %v710_v28  ;;  %v286_v39 = vmul.f32 %v3361_v35, %v3347_v6 }
 0x4aa   :  { %v3363_v36 = vpop.eup %3362 }
 0x4ab   :  { %v3294_v58 = vpop.permute.xlu1 %3293  ;;  %v3289_v50 = vpop.permute.xlu0 %3288  ;;  %v499_v43 = vmul.f32 %v3363_v36, %v3351_v12 }
 0x4ac   :  { %v3296_v31 = vunpack.i.h.bf16 %v3294_v58  ;;  %v3295_v32 = vunpack.i.l.bf16 %v3294_v58  ;;  %v3291_v54 = vunpack.i.h.bf16 %v3289_v50  ;;  %v3290_v33 = vunpack.i.l.bf16 %v3289_v50 }
 0x4ae   :  { %v3117_v34 = vpack.c.bf16 %v3291_v54, %v3290_v33  ;;  %v3127_v37 = vpack.c.bf16 %v3296_v31, %v3295_v32  ;;  %v3365_v41 = vpop.eup %3364 }
 0x4af   :  { %v3299_v38 = vpop.permute.xlu1 %3298  ;;  %v500_v51 = vmul.f32 %v3365_v41, %v3353_v14  ;;  %v809_v63 = vpop.permute.xlu0 %808 }
 0x4b0   :  { %3118 = vmatprep.subr.bf16.mxu1 %v3117_v34  ;;  %v3301_v47 = vunpack.i.h.bf16 %v3299_v38  ;;  %v3300_v49 = vunpack.i.l.bf16 %v3299_v38 }
 0x4b1   :  { %3120 = vmatpush3.bf16.msra.mxu1 %v3117_v34 }
 0x4b2   :  { %3128 = vmatprep.subr.bf16.mxu1 %v3127_v37  ;;  %v3367_v46 = vpop.eup %3366  ;;  %v3141_v55 = vpack.c.bf16 %v3301_v47, %v3300_v49 }
 0x4b3   :  { %v3369_v52 = vpop.eup %3368  ;;  %v713_v53 = vmul.f32 %v3367_v46, %v3357_v19  ;;  %v807_v62 = vpop.permute.xlu1 %806 }
 0x4b4   :  { %2921 = vmatmul.mubr.msk.f32.vlgmr.msra.gmra.mrb[2].mxu1 %vm264_vm3, %v286_v39  ;;  %v714_v61 = vmul.f32 %v3369_v52, %v3355_v17 }
 0x4b5   :  { %3130 = vmatpush3.bf16.msra.mxu1 %v3127_v37  ;;  %2934 = vmatprep.mubr.msk.f32.mxu1 %vm264_vm3, %v499_v43  ;;  %v169_v37 = vld [vmem:[%s4053_s5 + $0x9] ss:$0 sm:$0xff] }
 0x4b6   :  { %3138 = vmatprep.subr.bf16.mxu1 %v3588_v60 }
 0x4b8   :  { %2935 = vmatmul.mubr.msk.f32.vlgmr.msra.gmra.mrb[4].mxu1 %vm264_vm3, %v500_v51 }
 0x4b9   :  { %3140 = vmatpush3.bf16.msra.mxu1 %v3588_v60  ;;  %2948 = vmatprep.mubr.msk.f32.mxu1 %vm264_vm3, %v713_v53 }
 0x4ba   :  { %3143 = vmatprep.subr.msk.bf16.mxu1 %vm3606_vm2, %v3141_v55 }
 0x4bc   :  { %2949 = vmatmul.mubr.msk.f32.vlgmr.msra.gmra.mrb[6].mxu1 %vm264_vm3, %v714_v61 }
 0x4bd   :  { %2955 = vmatprep.mubr.msk.f32.mxu1 %vm176_vm1, %v807_v62 }
 0x4c2   :  { %3146 = vmatpush3.bf16.xpose.msk.msra.mxu1 %vm3606_vm2, %v3141_v55 }
 0x4c9   :  { %2956 = vmatmul.mubr.msk.f32.vlgmr.msra.gmra.mrb[8].mxu1 %vm176_vm1, %v809_v63 }
 0x587   :  { %v2922_v0 = vpop.f32.mrb[2].mxu1 }
 0x588   :  { %v365_v2 = vpop.f32.mrb[3].mxu1 }
 0x58b   :  { %v2936_v60 = vpop.f32.mrb[4].mxu1 }
 0x58c   :  { %v579_v3 = vpop.f32.mrb[5].mxu1 }
 0x58f   :  { %v2950_v4 = vpop.f32.mrb[6].mxu1 }
 0x590   :  { %v787_v5 = vpop.f32.mrb[7].mxu1 }
 0x59c   :  { %v2957_v6 = vpop.f32.mrb[8].mxu1 }
 0x59d   :  { %v898_v7 = vmul.f32 0.35355338, %v2957_v6  ;;  %v888_v8 = vpop.f32.mrb[9].mxu1 }
 0x59e   :  { %v897_v9 = vmul.f32 0.35355338, %v888_v8 }
 0x59f   :  { %v900_v10 = vadd.f32 %v898_v7, %v3631_v15 }
 0x5a0   :  { %v899_v11 = vadd.f32 %v897_v9, %v3636_v18 }
 0x5a1   :  { %v904_v12 = vsel %vm264_vm3, %v900_v10, -inf }
 0x5a2   :  { %905 = vmax.xlane.f32.xlu0 %v904_v12  ;;  %v901_v13 = vsel %vm264_vm3, %v899_v11, -inf }
 0x5a3   :  { %902 = vmax.xlane.f32.xlu1 %v901_v13  ;;  %v1067_v13 = vld [vmem:[%s4051_s3] sm:$0xff] }
 0x5b4   :  { %3303 = vrot.lane.b32.xlu1 %v3302_v59, %s3463_s27 }
 0x5b8   :  { %378 = vrot.lane.b32.xlu1 %v2922_v0, %s3471_s7 }
 0x5bc   :  { %590 = vrot.lane.b32.xlu1 %v579_v3, %s3471_s7 }
 0x5c0   :  { %592 = vrot.lane.b32.xlu1 %v2936_v60, %s3471_s7 }
 0x5c4   :  { %800 = vrot.lane.b32.xlu1 %v2950_v4, %s3471_s7  ;;  %v1032_v4 = vld [vmem:[%s4053_s5 + $0x2] ss:$0 sm:$0xff] }
 0x62f   :  { %v906_v14 = vpop.xlane.xlu0 %905 }
 0x630   :  { %v908_v16 = vsub.f32 %v900_v10, %v906_v14  ;;  %v903_v17 = vpop.xlane.xlu1 %902  ;;  %v1068_v14 = vld [vmem:[%s4051_s3 + $0x8] sm:$0xff] }
 0x631   :  { %v907_v19 = vsub.f32 %v899_v11, %v903_v17  ;;  %v1069_v17 = vld [vmem:[%s4051_s3 + $0x10] sm:$0xff] }
 0x632   :  { %v911_v20 = vmul.f32 1.442695, %v908_v16  ;;  %v3151_v16 = vpack.c.bf16 %v1068_v14, %v1067_v13 }
 0x633   :  { %v909_v21 = vmul.f32 1.442695, %v907_v19  ;;  %v1070_v19 = vld [vmem:[%s4051_s3 + $0x18] sm:$0xff] }
 0x634   :  { %v3304_v22 = vpop.permute.xlu1 %3303  ;;  %3152 = vmatprep.subr.bf16.mxu0 %v3151_v16 }
 0x635   :  { %3370 = vpow2.f32 %v909_v21  ;;  %v3306_v23 = vunpack.i.h.bf16 %v3304_v22  ;;  %v3305_v24 = vunpack.i.l.bf16 %v3304_v22  ;;  %3154 = vmatpush3.bf16.msra.mxu0 %v3151_v16 }
 0x636   :  { %3372 = vpow2.f32 %v911_v20  ;;  %v3155_v20 = vpack.c.bf16 %v1070_v19, %v1069_v17 }
 0x637   :  { %v3147_v56 = vpack.c.bf16 %v3306_v23, %v3305_v24 }
 0x638   :  { %v379_v33 = vpop.permute.xlu1 %378  ;;  %3156 = vmatprep.subr.bf16.mxu0 %v3155_v20 }
 0x639   :  { %3148 = vmatprep.subr.bf16.mxu1 %v3147_v56  ;;  %v383_v39 = vadd.f32 %v379_v33, %v169_v37  ;;  %3158 = vmatpush3.bf16.msra.mxu0 %v3155_v20 }
 0x63a   :  { %3150 = vmatpush3.bf16.msra.mxu1 %v3147_v56 }
 0x63c   :  { %v591_v34 = vpop.permute.xlu1 %590 }
 0x63f   :  { %v3371_v57 = vpop.eup %3370 }
 0x640   :  { %v913_v59 = vsel %vm264_vm3, %v3371_v57, 0.0  ;;  %v3373_v25 = vpop.eup %3372  ;;  %v593_v36 = vpop.permute.xlu1 %592 }
 0x641   :  { %914 = vadd.xlane.f32.xlu0 %v913_v59  ;;  %v916_v26 = vsel %vm264_vm3, %v3373_v25, 0.0  ;;  %v597_v46 = vadd.f32 %v593_v36, %v383_v39 }
 0x644   :  { %v801_v41 = vpop.permute.xlu1 %800 }
 0x645   :  { %917 = vadd.xlane.f32.xlu0 %v916_v26  ;;  %v805_v49 = vadd.f32 %v801_v41, %v597_v46  ;;  %v1077_v41 = vld [vmem:[%s4051_s3 + $0x50] sm:$0xff] }
 0x65b   :  { %376 = vrot.lane.b32.xlu0 %v365_v2, %s3471_s7 }
 0x65f   :  { %798 = vrot.lane.b32.xlu0 %v787_v5, %s3471_s7 }
 0x6ce   :  { %v915_v28 = vpop.xlane.xlu0 %914 }
 0x6cf   :  { %3374 = vrcp.f32 %v915_v28 }
 0x6d2   :  { %v918_v29 = vpop.xlane.xlu0 %917 }
 0x6d3   :  { %3376 = vrcp.f32 %v918_v29 }
 0x6d6   :  { %v377_v35 = vpop.permute.xlu0 %376 }
 0x6d7   :  { %v382_v38 = vadd.f32 %v377_v35, %v169_v37  ;;  %v1074_v35 = vld [vmem:[%s4051_s3 + $0x38] sm:$0xff]  ;;  %v1075_v37 = vld [vmem:[%s4051_s3 + $0x40] sm:$0xff] }
 0x6d9   :  { %v3375_v30 = vpop.eup %3374  ;;  %v596_v43 = vadd.f32 %v591_v34, %v382_v38  ;;  %v1073_v34 = vld [vmem:[%s4051_s3 + $0x30] sm:$0xff]  ;;  %v1076_v38 = vld [vmem:[%s4051_s3 + $0x48] sm:$0xff] }
 0x6da   :  { %v921_v58 = vmul.f32 %v3375_v30, %v3371_v57  ;;  %v799_v47 = vpop.permute.xlu0 %798  ;;  %v3163_v36 = vpack.c.bf16 %v1074_v35, %v1073_v34  ;;  %v3167_v39 = vpack.c.bf16 %v1076_v38, %v1075_v37  ;;  %v2755_v34 = vld [vmem:[%s4050_s2 + $0x68] sm:$0xff]  ;;  %v2757_v35 = vld [vmem:[%s4050_s2 + $0x78] sm:$0xff]  ;;  %v2754_v37 = vld [vmem:[%s4050_s2 + $0x60] sm:$0xff] }
 0x6db   :  { %v804_v51 = vadd.f32 %v799_v47, %v596_v43  ;;  %v1078_v43 = vld [vmem:[%s4051_s3 + $0x58] sm:$0xff]  ;;  %v2756_v38 = vld [vmem:[%s4050_s2 + $0x70] sm:$0xff] }
 0x6dc   :  { %2962 = vmatprep.mubr.msk.f32.mxu1 %vm264_vm3, %v921_v58  ;;  %v3171_v46 = vpack.c.bf16 %v1078_v43, %v1077_v41 }
 0x6dd   :  { %v3377_v50 = vpop.eup %3376 }
 0x6de   :  { %v922_v31 = vmul.f32 %v3377_v50, %v3373_v25 }
 0x6e0   :  { %2963 = vmatmul.mubr.msk.f32.vlgmr.msra.gmra.mrb[10].mxu1 %vm264_vm3, %v922_v31 }
 0x7b3   :  { %v2964_v32 = vpop.f32.mrb[10].mxu1 }
 0x7b4   :  { %1016 = vrot.lane.b32.xlu1 %v2964_v32, %s3471_s7  ;;  %v1003_v54 = vpop.f32.mrb[11].mxu1  ;;  %v1071_v32 = vld [vmem:[%s4051_s3 + $0x20] sm:$0xff] }
 0x7b5   :  { %1014 = vrot.lane.b32.xlu0 %v1003_v54, %s3471_s7  ;;  %v1072_v54 = vld [vmem:[%s4051_s3 + $0x28] sm:$0xff] }
 0x7b6   :  { %v3159_v33 = vpack.c.bf16 %v1072_v54, %v1071_v32  ;;  %v2752_v54 = vld [vmem:[%s4050_s2 + $0x50] sm:$0xff] }
 0x7b8   :  { %3160 = vmatprep.subr.bf16.mxu1 %v3159_v33 }
 0x7b9   :  { %3162 = vmatpush3.bf16.msra.mxu1 %v3159_v33 }
 0x7ba   :  { %3164 = vmatprep.subr.bf16.mxu1 %v3163_v36 }
 0x7bd   :  { %3166 = vmatpush3.bf16.msra.mxu1 %v3163_v36  ;;  %v3179_v36 = vpack.c.bf16 %v2757_v35, %v2755_v34 }
 0x7be   :  { %3168 = vmatprep.subr.bf16.mxu1 %v3167_v39 }
 0x7c1   :  { %3170 = vmatpush3.bf16.msra.mxu1 %v3167_v39  ;;  %v3181_v39 = vpack.c.bf16 %v2756_v38, %v2754_v37 }
 0x7c2   :  { %3172 = vmatprep.subr.bf16.mxu1 %v3171_v46 }
 0x7c5   :  { %3174 = vmatpush3.bf16.msra.mxu1 %v3171_v46 }
 0x826   :  { %v1017_v52 = vpop.permute.xlu1 %1016 }
 0x827   :  { %v1021_v53 = vadd.f32 %v1017_v52, %v805_v49  ;;  %v1015_v55 = vpop.permute.xlu0 %1014 }
 0x828   :  { %v1020_v61 = vadd.f32 %v1015_v55, %v804_v51 }
 0x829   :  { %1026 = vrot.lane.b32.xlu1 %v1021_v53, %s3471_s7 }
 0x82a   :  { %1024 = vrot.lane.b32.xlu0 %v1020_v61, %s3471_s7 }
 0x89b   :  { %v1027_v62 = vpop.permute.xlu1 %1026 }
 0x89c   :  { %v1031_v63 = vadd.f32 %v1027_v62, %v3555_v42  ;;  %v1025_v0 = vpop.permute.xlu0 %1024 }
 0x89d   :  { %v1030_v2 = vadd.f32 %v1025_v0, %v3550_v40 }
 0x89e   :  { %v1036_v60 = vsel %vm29_vm0, %v1031_v63, 0.0 }
 0x89f   :  { %1037 = vadd.xlane.f32.xlu1 %v1036_v60  ;;  %v1033_v3 = vsel %vm29_vm0, %v1030_v2, 0.0 }
 0x8a0   :  { %1034 = vadd.xlane.f32.xlu0 %v1033_v3 }
 0x8b0   :  { %1079 = vrot.lane.b32.xlu1 %v1032_v4, %s3471_s7 }
 0x92c   :  { %v1038_v5 = vpop.xlane.xlu1 %1037 }
 0x92d   :  { %v1040_v6 = vmul.f32 0.03125, %v1038_v5  ;;  %v1035_v7 = vpop.xlane.xlu0 %1034 }
 0x92e   :  { %v1039_v8 = vmul.f32 0.03125, %v1035_v7 }
 0x92f   :  { %v1042_v42 = vsub.f32 %v1031_v63, %v1040_v6 }
 0x930   :  { %v1041_v9 = vsub.f32 %v1030_v2, %v1039_v8  ;;  %v1080_v47 = vpop.permute.xlu1 %1079 }
 0x931   :  { %v1044_v11 = vmul.f32 %v1042_v42, %v1042_v42 }
 0x932   :  { %v1043_v10 = vmul.f32 %v1041_v9, %v1041_v9 }
 0x933   :  { %v1048_v12 = vsel %vm29_vm0, %v1044_v11, 0.0 }
 0x934   :  { %v1045_v40 = vsel %vm29_vm0, %v1043_v10, 0.0 }
 0x935   :  { %1046 = vadd.xlane.f32.xlu0 %v1045_v40 }
 0x939   :  { %1049 = vadd.xlane.f32.xlu0 %v1048_v12  ;;  %v1181_v12 = vld [vmem:[%s4053_s5 + $0xa] ss:$0 sm:$0xff] }
 0x94f   :  { %1062 = vrot.lane.b32.xlu0 %v1032_v4, %s3463_s27 }
 0x9c2   :  { %v1047_v21 = vpop.xlane.xlu0 %1046 }
 0x9c3   :  { %v1051_v22 = vmul.f32 0.03125, %v1047_v21 }
 0x9c5   :  { %v1053_v23 = vadd.f32 1e-12, %v1051_v22 }
 0x9c6   :  { %v1050_v24 = vpop.xlane.xlu0 %1049 }
 0x9c7   :  { %3378 = vrsqrt.f32 %v1053_v23  ;;  %v1052_v56 = vmul.f32 0.03125, %v1050_v24 }
 0x9c9   :  { %v1054_v57 = vadd.f32 1e-12, %v1052_v56 }
 0x9ca   :  { %v1063_v26 = vpop.permute.xlu0 %1062 }
 0x9cb   :  { %3380 = vrsqrt.f32 %v1054_v57 }
 0x9d1   :  { %v3379_v59 = vpop.eup %3378 }
 0x9d2   :  { %v1057_v25 = vmul.f32 %v3379_v59, %v1041_v9 }
 0x9d4   :  { %v1059_v28 = vmul.f32 %v1057_v25, %v1032_v4 }
 0x9d5   :  { %v3381_v29 = vpop.eup %3380 }
 0x9d6   :  { %v1058_v30 = vmul.f32 %v3381_v29, %v1042_v42  ;;  %v1065_v58 = vadd.f32 %v1063_v26, %v1059_v28 }
 0x9d8   :  { %v1060_v50 = vmul.f32 %v1058_v30, %v1032_v4  ;;  %2973 = vmatprep.mubr.msk.f32.mxu0 %vm29_vm0, %v1065_v58 }
 0x9da   :  { %v1066_v31 = vadd.f32 %v1063_v26, %v1060_v50  ;;  %v2753_v50 = vld [vmem:[%s4050_s2 + $0x58] sm:$0xff] }
 0x9dc   :  { %2974 = vmatmul.mubr.msk.f32.vlgmr.msra.gmra.mrb[8].mxu0 %vm29_vm0, %v1066_v31 }
 0x9dd   :  { %1395 = vmatprep.mubr.f32.mxu0 %v3464_v27 }
 0xaaf   :  { %v2975_v49 = vpop.f32.mrb[8].mxu0 }
 0xab0   :  { %v1160_v51 = vadd.f32 %v2975_v49, %v1080_v47  ;;  %v1154_v52 = vpop.f32.mrb[9].mxu0 }
 0xab1   :  { %v1155_v53 = vadd.f32 %v1154_v52, %v1080_v47 }
 0xab2   :  { %v1164_v55 = vmul.f32 %v1160_v51, %v1160_v51 }
 0xab3   :  { %v1163_v61 = vmul.f32 %v1155_v53, %v1155_v53 }
 0xab4   :  { %v1166_v62 = vmul.f32 %v1164_v55, %v1160_v51 }
 0xab5   :  { %v1165_v63 = vmul.f32 %v1163_v61, %v1155_v53 }
 0xab6   :  { %v1168_v0 = vmul.f32 0.044715, %v1166_v62 }
 0xab7   :  { %v1167_v2 = vmul.f32 0.044715, %v1165_v63 }
 0xab8   :  { %v1170_v60 = vadd.f32 %v1168_v0, %v1160_v51 }
 0xab9   :  { %v1169_v3 = vadd.f32 %v1167_v2, %v1155_v53 }
 0xaba   :  { %v1172_v4 = vmul.f32 0.7978846, %v1170_v60 }
 0xabb   :  { %v1171_v5 = vmul.f32 0.7978846, %v1169_v3 }
 0xabc   :  { %3382 = vtanh.f32 %v1172_v4  ;;  %v2758_v4 = vld [vmem:[%s4053_s5 + $0x3] ss:$8 sm:$0x3] }
 0xabd   :  { %3384 = vtanh.f32 %v1171_v5  ;;  %v1318_v5 = vrot.slane %v2758_v4, %v78_v45 }
 0xac6   :  { %v3383_v6 = vpop.eup %3382 }
 0xac7   :  { %v3385_v7 = vpop.eup %3384  ;;  %v1176_v8 = vadd.f32 1.0, %v3383_v6 }
 0xac8   :  { %v1175_v42 = vadd.f32 1.0, %v3385_v7 }
 0xac9   :  { %v1178_v9 = vmul.f32 0.5, %v1176_v8 }
 0xaca   :  { %v1177_v10 = vmul.f32 0.5, %v1175_v42  ;;  %v1322_v42 = vrot.slane %v2758_v4, %v82_v48 }
 0xacb   :  { %v1180_v11 = vmul.f32 %v1178_v9, %v1160_v51 }
 0xacc   :  { %v1179_v40 = vmul.f32 %v1177_v10, %v1155_v53 }
 0xace   :  { %2992 = vmatprep.mubr.msk.f32.mxu1 %vm1182_vm4, %v1179_v40 }
 0xacf   :  { %2993 = vmatmul.mubr.msk.f32.vlgmr.msra.gmra.mrb[12].mxu1 %vm1182_vm4, %v1180_v11 }
 0xba2   :  { %v2994_v13 = vpop.f32.mrb[12].mxu1 }
 0xba3   :  { %v1261_v14 = vadd.f32 %v2994_v13, %v1181_v12  ;;  %v1255_v16 = vpop.f32.mrb[13].mxu1 }
 0xba4   :  { %v1256_v17 = vadd.f32 %v1255_v16, %v1181_v12 }
 0xba5   :  { %v1265_v19 = vadd.f32 %v1261_v14, %v1066_v31  ;;  %v2750_v31 = vld [vmem:[%s4050_s2 + $0x40] sm:$0xff] }
 0xba6   :  { %v1264_v20 = vadd.f32 %v1256_v17, %v1065_v58  ;;  %v2751_v58 = vld [vmem:[%s4050_s2 + $0x48] sm:$0xff]  ;;  %v3177_v33 = vpack.c.bf16 %v2752_v54, %v2750_v31 }
 0xba7   :  { %v1269_v21 = vsel %vm29_vm0, %v1265_v19, 0.0  ;;  %v3175_v32 = vpack.c.bf16 %v2753_v50, %v2751_v58 }
 0xba8   :  { %1270 = vadd.xlane.f32.xlu0 %v1269_v21  ;;  %v1266_v22 = vsel %vm29_vm0, %v1264_v20, 0.0 }
 0xba9   :  { %1267 = vadd.xlane.f32.xlu1 %v1266_v22  ;;  %3176 = vmatprep.subr.bf16.mxu0 %v3175_v32 }
 0xbaa   :  { %3178 = vmatpush1.bf16.msra.mxu0 %v3177_v33 }
 0xbab   :  { %3180 = vmatprep.subr.bf16.mxu0 %v3179_v36 }
 0xbae   :  { %3182 = vmatpush1.bf16.msra.mxu0 %v3181_v39 }
 0xc35   :  { %v1271_v23 = vpop.xlane.xlu0 %1270 }
 0xc36   :  { %v1273_v24 = vmul.f32 0.03125, %v1271_v23  ;;  %v1268_v56 = vpop.xlane.xlu1 %1267 }
 0xc37   :  { %v1272_v57 = vmul.f32 0.03125, %v1268_v56 }
 0xc38   :  { %v1275_v59 = vsub.f32 %v1265_v19, %v1273_v24 }
 0xc39   :  { %v1274_v25 = vsub.f32 %v1264_v20, %v1272_v57 }
 0xc3a   :  { %v1277_v26 = vmul.f32 %v1275_v59, %v1275_v59 }
 0xc3b   :  { %v1276_v28 = vmul.f32 %v1274_v25, %v1274_v25 }
 0xc3c   :  { %v1281_v29 = vsel %vm29_vm0, %v1277_v26, 0.0 }
 0xc3d   :  { %1282 = vadd.xlane.f32.xlu1 %v1281_v29  ;;  %v1278_v30 = vsel %vm29_vm0, %v1276_v28, 0.0 }
 0xc3e   :  { %1279 = vadd.xlane.f32.xlu0 %v1278_v30 }
 0xc4e   :  { %1298 = vrot.lane.b32.xlu1 %v1181_v12, %s3471_s7 }
 0xc54   :  { %1293 = vrot.lane.b32.xlu0 %v1181_v12, %s3463_s27 }
 0xcca   :  { %v1283_v41 = vpop.xlane.xlu1 %1282 }
 0xccb   :  { %v1285_v43 = vmul.f32 0.03125, %v1283_v41  ;;  %v1280_v46 = vpop.xlane.xlu0 %1279 }
 0xccc   :  { %v1284_v47 = vmul.f32 0.03125, %v1280_v46 }
 0xccd   :  { %v1287_v49 = vadd.f32 1e-12, %v1285_v43 }
 0xcce   :  { %v1286_v51 = vadd.f32 1e-12, %v1284_v47  ;;  %v1299_v63 = vpop.permute.xlu1 %1298 }
 0xccf   :  { %3386 = vrsqrt.f32 %v1287_v49  ;;  %v1294_v55 = vpop.permute.xlu0 %1293 }
 0xcd0   :  { %3388 = vrsqrt.f32 %v1286_v51 }
 0xcd9   :  { %v3387_v52 = vpop.eup %3386 }
 0xcda   :  { %v3389_v53 = vpop.eup %3388  ;;  %v1291_v62 = vmul.f32 %v3387_v52, %v1275_v59 }
 0xcdb   :  { %v1290_v61 = vmul.f32 %v3389_v53, %v1274_v25 }
 0xcdc   :  { %v1297_v2 = vmul.f32 %v1294_v55, %v1291_v62 }
 0xcdd   :  { %v1296_v0 = vmul.f32 %v1294_v55, %v1290_v61 }
 0xcde   :  { %v3795_v3 = vadd.f32 %v1299_v63, %v1297_v2 }
 0xcdf   :  { %v3790_v60 = vadd.f32 %v1299_v63, %v1296_v0 }
 0xce1   :  { %2759 = vmatmul.mubr.msk.f32.vlgmr.msra.gmra.mrb[10].mxu0 %vm29_vm0, %v3790_v60 }
 0xce2   :  { %1401 = vmatprep.mubr.f32.mxu0 %v3464_v27 }
 0xce5   :  { %2760 = vmatmul.mubr.msk.f32.gmra.mrb[12].mxu0 %vm29_vm0, %v3795_v3 }
 0xdb4   :  { %v1397_v6 = vpop.f32.mrb[10].mxu0 }
 0xdb5   :  { %v3804_v7 = vadd.f32 %v1397_v6, %v1318_v5  ;;  %v1399_v8 = vpop.f32.mrb[11].mxu0 }
 0xdb6   :  { %v3812_v11 = vadd.f32 %v1399_v8, %v1322_v42 }
 0xdb7   :  { %2999 = vmatprep.mubr.msk.f32.mxu0 %vm176_vm1, %v3804_v7 }
 0xdb8   :  { %v1403_v9 = vpop.f32.mrb[12].mxu0 }
 0xdb9   :  { %v3810_v10 = vadd.f32 %v1403_v9, %v1318_v5  ;;  %v1405_v40 = vpop.f32.mrb[13].mxu0 }
 0xdba   :  { %v3814_v12 = vadd.f32 %v1405_v40, %v1322_v42 }
 0xdbb   :  { %v3818_v45 = vpack.i.bf16 %v3810_v10, %v3804_v7 }
 0xdbc   :  { %v3337_v13 = vpack.i.bf16 %v3814_v12, %v3812_v11  ;;  %v3824_v44 = vpack.c.bf16 %v3814_v12, %v3812_v11 }
 0xdbd   :  { %3308 = vrot.lane.b32.xlu1 %v3818_v45, %s3463_s27 }
 0xe2f   :  { %v3309_v48 = vpop.permute.xlu1 %3308 }
 0xe30   :  { %v3311_v14 = vunpack.i.h.bf16 %v3309_v48  ;;  %v3310_v16 = vunpack.i.l.bf16 %v3309_v48 }
 0xe32   :  { %v3183_v17 = vpack.c.bf16 %v3311_v14, %v3310_v16 }
 0xe34   :  { %3185 = vmatprep.subr.msk.bf16.mxu0 %vm3606_vm2, %v3183_v17 }
 0xe35   :  { %3188 = vmatpush3.bf16.xpose.msk.msra.mxu0 %vm3606_vm2, %v3183_v17 }
 0xe3c   :  { %3000 = vmatmul.mubr.msk.f32.vlgmr.msra.gmra.mrb[14].mxu0 %vm176_vm1, %v3810_v10 }
 0xf0f   :  { %v3001_v19 = vpop.f32.mrb[14].mxu0 }
 0xf10   :  { %v1499_v20 = vmul.f32 0.35355338, %v3001_v19  ;;  %v1489_v21 = vpop.f32.mrb[15].mxu0 }
 0xf11   :  { %v1498_v22 = vmul.f32 0.35355338, %v1489_v21 }
 0xf12   :  { %v1501_v23 = vadd.f32 %v1499_v20, %v3631_v15 }
 0xf13   :  { %v1500_v24 = vadd.f32 %v1498_v22, %v3636_v18 }
 0xf14   :  { %v1505_v56 = vsel %vm264_vm3, %v1501_v23, -inf }
 0xf15   :  { %1506 = vmax.xlane.f32.xlu0 %v1505_v56  ;;  %v1502_v57 = vsel %vm264_vm3, %v1500_v24, -inf }
 0xf16   :  { %1503 = vmax.xlane.f32.xlu1 %v1502_v57 }
 0xf27   :  { %3313 = vrot.lane.b32.xlu1 %v3818_v45, %s3471_s7 }
 0xf2b   :  { %1621 = vrot.lane.b32.xlu1 %v3804_v7, %s3468_s24 }
 0xf2f   :  { %1623 = vrot.lane.b32.xlu1 %v3810_v10, %s3468_s24 }
 0xfa2   :  { %v1507_v59 = vpop.xlane.xlu0 %1506 }
 0xfa3   :  { %v1509_v25 = vsub.f32 %v1501_v23, %v1507_v59  ;;  %v1504_v26 = vpop.xlane.xlu1 %1503 }
 0xfa4   :  { %v1508_v28 = vsub.f32 %v1500_v24, %v1504_v26 }
 0xfa5   :  { %v1512_v29 = vmul.f32 1.442695, %v1509_v25 }
 0xfa6   :  { %v1510_v30 = vmul.f32 1.442695, %v1508_v28 }
 0xfa7   :  { %3390 = vpow2.f32 %v1512_v29  ;;  %v3314_v58 = vpop.permute.xlu1 %3313 }
 0xfa8   :  { %v3316_v50 = vunpack.i.h.bf16 %v3314_v58  ;;  %v3315_v31 = vunpack.i.l.bf16 %v3314_v58  ;;  %3392 = vpow2.f32 %v1510_v30 }
 0xfaa   :  { %v3189_v32 = vpack.c.bf16 %v3316_v50, %v3315_v31 }
 0xfab   :  { %v1622_v52 = vpop.permute.xlu1 %1621 }
 0xfac   :  { %3190 = vmatprep.subr.bf16.mxu1 %v3189_v32 }
 0xfad   :  { %3192 = vmatpush3.bf16.msra.mxu1 %v3189_v32 }
 0xfaf   :  { %v1624_v53 = vpop.permute.xlu1 %1623 }
 0xfb1   :  { %v3391_v54 = vpop.eup %3390 }
 0xfb2   :  { %v1517_v33 = vsel %vm264_vm3, %v3391_v54, 0.0  ;;  %v3393_v34 = vpop.eup %3392 }
 0xfb3   :  { %1518 = vadd.xlane.f32.xlu0 %v1517_v33  ;;  %v1514_v35 = vsel %vm264_vm3, %v3393_v34, 0.0 }
 0xfb7   :  { %1515 = vadd.xlane.f32.xlu0 %v1514_v35 }
 0xfcd   :  { %3318 = vrot.lane.b32.xlu0 %v3818_v45, %s3467_s23 }
0x1040   :  { %v1519_v36 = vpop.xlane.xlu0 %1518 }
0x1041   :  { %3394 = vrcp.f32 %v1519_v36  ;;  %v3436_v36 = vld [vmem:[%s4049_s1 + $0x8] sm:$0xff] }
0x1044   :  { %v1516_v37 = vpop.xlane.xlu0 %1515 }
0x1045   :  { %3396 = vrcp.f32 %v1516_v37 }
0x1048   :  { %v3319_v38 = vpop.permute.xlu0 %3318 }
0x1049   :  { %v3321_v39 = vunpack.i.h.bf16 %v3319_v38  ;;  %v3320_v41 = vunpack.i.l.bf16 %v3319_v38  ;;  %v3437_v38 = vld [vmem:[%s4049_s1] sm:$0xff] }
0x104b   :  { %v3193_v43 = vpack.c.bf16 %v3321_v39, %v3320_v41  ;;  %v3395_v46 = vpop.eup %3394 }
0x104c   :  { %v1523_v51 = vmul.f32 %v3395_v46, %v3391_v54 }
0x104d   :  { %3195 = vmatprep.subr.msk.bf16.mxu1 %vm3606_vm2, %v3193_v43 }
0x104f   :  { %v3397_v47 = vpop.eup %3396 }
0x1050   :  { %v1522_v49 = vmul.f32 %v3397_v47, %v3393_v34 }
0x1052   :  { %3006 = vmatprep.mubr.msk.f32.mxu1 %vm264_vm3, %v1522_v49 }
0x1053   :  { %3007 = vmatmul.mubr.msk.f32.vlgmr.msra.gmra.mrb[14].mxu1 %vm264_vm3, %v1523_v51 }
0x1054   :  { %3198 = vmatpush3.bf16.xpose.msk.msra.mxu1 %vm3606_vm2, %v3193_v43  ;;  %3013 = vmatprep.mubr.msk.f32.mxu1 %vm176_vm1, %v1622_v52 }
0x1055   :  { %3210 = vmatprep.subr.bf16.mxu1 %v3824_v44 }
0x105b   :  { %3014 = vmatmul.mubr.msk.f32.vlgmr.msra.gmra.mrb[16].mxu1 %vm176_vm1, %v1624_v53 }
0x105c   :  { %3212 = vmatpush3.bf16.msra.mxu1 %v3824_v44 }
0x1126   :  { %v3858_v55 = vpop.f32.mrb[14].mxu1 }
0x1127   :  { %v3860_v61 = vpop.f32.mrb[15].mxu1 }
0x112e   :  { %v3015_v62 = vpop.f32.mrb[16].mxu1 }
0x112f   :  { %v1713_v63 = vmul.f32 0.35355338, %v3015_v62  ;;  %v1703_v0 = vpop.f32.mrb[17].mxu1 }
0x1130   :  { %v1712_v2 = vmul.f32 0.35355338, %v1703_v0 }
0x1131   :  { %v1715_v4 = vadd.f32 %v1713_v63, %v3631_v15 }
0x1132   :  { %v1714_v5 = vadd.f32 %v1712_v2, %v3636_v18 }
0x1133   :  { %v1719_v6 = vsel %vm264_vm3, %v1715_v4, -inf }
0x1134   :  { %1720 = vmax.xlane.f32.xlu0 %v1719_v6  ;;  %v1716_v8 = vsel %vm264_vm3, %v1714_v5, -inf }
0x1135   :  { %1717 = vmax.xlane.f32.xlu1 %v1716_v8 }
0x1146   :  { %3323 = vrot.lane.b32.xlu1 %v3818_v45, %s3469_s29 }
0x114a   :  { %1835 = vrot.lane.b32.xlu1 %v3804_v7, %s3466_s22 }
0x114e   :  { %1837 = vrot.lane.b32.xlu1 %v3810_v10, %s3466_s22  ;;  %s3475_s22 = smov [#allocation2]  }
0x114f   :  { %s2711_s23 = sshll.u32 %s3475_s22, 4  ;;  %s2712_s23 = int_to_ptr.vmem [resolvable:$true] %s2711_s23 }
0x1150   :  { %p3444_p1 = scmp.lt.s32.totalorder %s2712_s23, %s2712_s23 }
0x11c1   :  { %v1721_v42 = vpop.xlane.xlu0 %1720 }
0x11c2   :  { %v1723_v9 = vsub.f32 %v1715_v4, %v1721_v42  ;;  %v1718_v15 = vpop.xlane.xlu1 %1717 }
0x11c3   :  { %v1722_v40 = vsub.f32 %v1714_v5, %v1718_v15 }
0x11c4   :  { %v1726_v18 = vmul.f32 1.442695, %v1723_v9 }
0x11c5   :  { %v1724_v44 = vmul.f32 1.442695, %v1722_v40 }
0x11c6   :  { %3398 = vpow2.f32 %v1726_v18  ;;  %v3324_v48 = vpop.permute.xlu1 %3323 }
0x11c7   :  { %v3326_v14 = vunpack.i.h.bf16 %v3324_v48  ;;  %v3325_v16 = vunpack.i.l.bf16 %v3324_v48  ;;  %3400 = vpow2.f32 %v1724_v44 }
0x11c9   :  { %v3199_v17 = vpack.c.bf16 %v3326_v14, %v3325_v16 }
0x11ca   :  { %v1836_v58 = vpop.permute.xlu1 %1835 }
0x11cb   :  { %3200 = vmatprep.subr.bf16.mxu0 %v3199_v17 }
0x11cc   :  { %3202 = vmatpush3.bf16.msra.mxu0 %v3199_v17 }
0x11ce   :  { %v1838_v50 = vpop.permute.xlu1 %1837 }
0x11d0   :  { %v3399_v19 = vpop.eup %3398 }
0x11d1   :  { %v1731_v20 = vsel %vm264_vm3, %v3399_v19, 0.0  ;;  %v3401_v21 = vpop.eup %3400 }
0x11d2   :  { %1732 = vadd.xlane.f32.xlu0 %v1731_v20  ;;  %v1728_v22 = vsel %vm264_vm3, %v3401_v21, 0.0 }
0x11d6   :  { %1729 = vadd.xlane.f32.xlu0 %v1728_v22 }
0x11ec   :  { %3328 = vrot.lane.b32.xlu0 %v3818_v45, %s3465_s21 }
0x125f   :  { %v1733_v23 = vpop.xlane.xlu0 %1732 }
0x1260   :  { %3402 = vrcp.f32 %v1733_v23 }
0x1263   :  { %v1730_v24 = vpop.xlane.xlu0 %1729 }
0x1264   :  { %3404 = vrcp.f32 %v1730_v24 }
0x1267   :  { %v3329_v56 = vpop.permute.xlu0 %3328 }
0x1268   :  { %v3331_v57 = vunpack.i.h.bf16 %v3329_v56  ;;  %v3330_v59 = vunpack.i.l.bf16 %v3329_v56 }
0x126a   :  { %v3203_v25 = vpack.c.bf16 %v3331_v57, %v3330_v59  ;;  %v3403_v26 = vpop.eup %3402 }
0x126b   :  { %v1737_v30 = vmul.f32 %v3403_v26, %v3399_v19 }
0x126c   :  { %3205 = vmatprep.subr.msk.bf16.mxu0 %vm3606_vm2, %v3203_v25 }
0x126e   :  { %v3405_v28 = vpop.eup %3404 }
0x126f   :  { %v1736_v29 = vmul.f32 %v3405_v28, %v3401_v21 }
0x1271   :  { %3020 = vmatprep.mubr.msk.f32.mxu0 %vm264_vm3, %v1736_v29 }
0x1272   :  { %3021 = vmatmul.mubr.msk.f32.vlgmr.msra.gmra.mrb[16].mxu0 %vm264_vm3, %v1737_v30 }
0x1273   :  { %3208 = vmatpush3.bf16.xpose.msk.msra.mxu0 %vm3606_vm2, %v3203_v25  ;;  %3027 = vmatprep.mubr.msk.f32.mxu0 %vm176_vm1, %v1836_v58 }
0x127a   :  { %3028 = vmatmul.mubr.msk.f32.vlgmr.msra.gmra.mrb[18].mxu0 %vm176_vm1, %v1838_v50 }
0x1345   :  { %v3884_v31 = vpop.f32.mrb[16].mxu0 }
0x1346   :  { %v3886_v32 = vpop.f32.mrb[17].mxu0 }
0x134d   :  { %v3029_v54 = vpop.f32.mrb[18].mxu0 }
0x134e   :  { %v1927_v33 = vmul.f32 0.35355338, %v3029_v54  ;;  %v1917_v34 = vpop.f32.mrb[19].mxu0 }
0x134f   :  { %v1926_v35 = vmul.f32 0.35355338, %v1917_v34 }
0x1350   :  { %v1929_v37 = vadd.f32 %v3436_v36, %v1927_v33 }
0x1351   :  { %v1928_v39 = vadd.f32 %v3437_v38, %v1926_v35 }
0x1352   :  { %v1933_v41 = vsel %vm264_vm3, %v1929_v37, -inf }
0x1353   :  { %1934 = vmax.xlane.f32.xlu0 %v1933_v41  ;;  %v1930_v43 = vsel %vm264_vm3, %v1928_v39, -inf }
0x1354   :  { %1931 = vmax.xlane.f32.xlu1 %v1930_v43 }
0x1365   :  { %3333 = vrot.lane.b32.xlu1 %v3818_v45, %s3470_s30 }
0x1369   :  { %2045 = vrot.lane.b32.xlu1 %v3810_v10, %s3472_s8 }
0x13e0   :  { %v1935_v46 = vpop.xlane.xlu0 %1934 }
0x13e1   :  { %v1937_v47 = vsub.f32 %v1929_v37, %v1935_v46  ;;  %v1932_v49 = vpop.xlane.xlu1 %1931  ;;  %v1408_v37 = vld [vmem:[%s4053_s5 + $0xb] ss:$0 sm:$0xff] }
0x13e2   :  { %v1936_v51 = vsub.f32 %v1928_v39, %v1932_v49 }
0x13e3   :  { %v1940_v52 = vmul.f32 1.442695, %v1937_v47 }
0x13e4   :  { %v1938_v53 = vmul.f32 1.442695, %v1936_v51 }
0x13e5   :  { %v3334_v62 = vpop.permute.xlu1 %3333 }
0x13e6   :  { %3406 = vpow2.f32 %v1938_v53  ;;  %v3336_v63 = vunpack.i.h.bf16 %v3334_v62  ;;  %v3335_v0 = vunpack.i.l.bf16 %v3334_v62 }
0x13e7   :  { %3408 = vpow2.f32 %v1940_v52 }
0x13e8   :  { %v3213_v2 = vpack.c.bf16 %v3336_v63, %v3335_v0 }
0x13e9   :  { %v2046_v44 = vpop.permute.xlu1 %2045 }
0x13ea   :  { %3215 = vmatprep.subr.msk.bf16.mxu1 %vm3606_vm2, %v3213_v2 }
0x13f0   :  { %v3407_v4 = vpop.eup %3406 }
0x13f1   :  { %v1942_v45 = vsel %vm264_vm3, %v3407_v4, 0.0  ;;  %v3409_v5 = vpop.eup %3408 }
0x13f2   :  { %1943 = vadd.xlane.f32.xlu0 %v1942_v45  ;;  %v1945_v10 = vsel %vm264_vm3, %v3409_v5, 0.0 }
0x13f6   :  { %1946 = vadd.xlane.f32.xlu0 %v1945_v10 }
0x140c   :  { %2043 = vrot.lane.b32.xlu0 %v3804_v7, %s3472_s8 }
0x147f   :  { %v1944_v6 = vpop.xlane.xlu0 %1943 }
0x1480   :  { %3410 = vrcp.f32 %v1944_v6 }
0x1483   :  { %v1947_v8 = vpop.xlane.xlu0 %1946 }
0x1484   :  { %3412 = vrcp.f32 %v1947_v8 }
0x1487   :  { %v2044_v18 = vpop.permute.xlu0 %2043 }
0x148a   :  { %v3411_v42 = vpop.eup %3410 }
0x148b   :  { %v1950_v9 = vmul.f32 %v3411_v42, %v3407_v4  ;;  %v2269_v42 = vld [vmem:[%s4053_s5 + $0x4] ss:$0 sm:$0xff] }
0x148d   :  { %3034 = vmatprep.mubr.msk.f32.mxu1 %vm264_vm3, %v1950_v9 }
0x148e   :  { %v3413_v15 = vpop.eup %3412 }
0x148f   :  { %v1951_v40 = vmul.f32 %v3413_v15, %v3409_v5 }
0x1491   :  { %3035 = vmatmul.mubr.msk.f32.vlgmr.msra.gmra.mrb[18].mxu1 %vm264_vm3, %v1951_v40 }
0x1492   :  { %3218 = vmatpush3.bf16.xpose.msk.msra.mxu1 %vm3606_vm2, %v3213_v2  ;;  %3041 = vmatprep.mubr.msk.f32.mxu1 %vm176_vm1, %v2044_v18 }
0x1499   :  { %3042 = vmatmul.mubr.msk.f32.vlgmr.msra.gmra.mrb[20].mxu1 %vm176_vm1, %v2046_v44 }
0x1564   :  { %v3036_v7 = vpop.f32.mrb[18].mxu1 }
0x1565   :  { %v2024_v48 = vpop.f32.mrb[19].mxu1 }
0x156c   :  { %v3043_v14 = vpop.f32.mrb[20].mxu1 }
0x156d   :  { %v2135_v16 = vmul.f32 0.35355338, %v3043_v14  ;;  %v2125_v17 = vpop.f32.mrb[21].mxu1 }
0x156e   :  { %v2134_v19 = vmul.f32 0.35355338, %v2125_v17  ;;  %v2786_v17 = vld [vmem:[%s4051_s3 + $0x68] sm:$0xff] }
0x156f   :  { %v2137_v20 = vadd.f32 %v3436_v36, %v2135_v16  ;;  %v2785_v16 = vld [vmem:[%s4051_s3 + $0x60] sm:$0xff] }
0x1570   :  { %v2136_v21 = vadd.f32 %v3437_v38, %v2134_v19  ;;  %v3223_v19 = vpack.c.bf16 %v2786_v17, %v2785_v16 }
0x1571   :  { %v2141_v22 = vsel %vm264_vm3, %v2137_v20, -inf }
0x1572   :  { %2142 = vmax.xlane.f32.xlu0 %v2141_v22  ;;  %v2138_v23 = vsel %vm264_vm3, %v2136_v21, -inf }
0x1573   :  { %2139 = vmax.xlane.f32.xlu1 %v2138_v23 }
0x15ff   :  { %v2143_v1 = vpop.xlane.xlu0 %2142 }
0x1600   :  { %v2145_v24 = vsub.f32 %v2137_v20, %v2143_v1  ;;  %v2140_v56 = vpop.xlane.xlu1 %2139  ;;  %v2787_v20 = vld [vmem:[%s4051_s3 + $0x70] sm:$0xff] }
0x1601   :  { %v2144_v57 = vsub.f32 %v2136_v21, %v2140_v56  ;;  %v2788_v21 = vld [vmem:[%s4051_s3 + $0x78] sm:$0xff] }
0x1602   :  { %v2148_v59 = vmul.f32 1.442695, %v2145_v24  ;;  %v3227_v22 = vpack.c.bf16 %v2788_v21, %v2787_v20 }
0x1603   :  { %v2146_v25 = vmul.f32 1.442695, %v2144_v57 }
0x1604   :  { %3414 = vpow2.f32 %v2148_v59 }
0x1605   :  { %3416 = vpow2.f32 %v2146_v25 }
0x160e   :  { %v3415_v26 = vpop.eup %3414 }
0x160f   :  { %v3417_v28 = vpop.eup %3416  ;;  %v2153_v29 = vsel %vm264_vm3, %v3415_v26, 0.0 }
0x1610   :  { %2154 = vadd.xlane.f32.xlu1 %v2153_v29  ;;  %v2150_v30 = vsel %vm264_vm3, %v3417_v28, 0.0 }
0x1611   :  { %2151 = vadd.xlane.f32.xlu0 %v2150_v30 }
0x1621   :  { %1613 = vrot.lane.b32.xlu1 %v3860_v61, %s3471_s7 }
0x1625   :  { %1615 = vrot.lane.b32.xlu1 %v3858_v55, %s3471_s7 }
0x1627   :  { %3338 = vrot.lane.b32.xlu0 %v3337_v13, %s3463_s27 }
0x1629   :  { %1827 = vrot.lane.b32.xlu1 %v3886_v32, %s3471_s7 }
0x162b   :  { %1829 = vrot.lane.b32.xlu0 %v3884_v31, %s3471_s7 }
0x162d   :  { %2035 = vrot.lane.b32.xlu1 %v2024_v48, %s3471_s7 }
0x162f   :  { %2037 = vrot.lane.b32.xlu0 %v3036_v7, %s3471_s7 }
0x169d   :  { %v2155_v58 = vpop.xlane.xlu1 %2154 }
0x169e   :  { %3418 = vrcp.f32 %v2155_v58  ;;  %v2152_v61 = vpop.xlane.xlu0 %2151 }
0x169f   :  { %3420 = vrcp.f32 %v2152_v61 }
0x16a1   :  { %v1614_v35 = vpop.permute.xlu1 %1613 }
0x16a2   :  { %v3339_v55 = vpop.permute.xlu0 %3338  ;;  %v1619_v46 = vadd.f32 %v1614_v35, %v1408_v37 }
0x16a3   :  { %v3341_v50 = vunpack.i.h.bf16 %v3339_v55  ;;  %v3340_v54 = vunpack.i.l.bf16 %v3339_v55 }
0x16a5   :  { %v3219_v33 = vpack.c.bf16 %v3341_v50, %v3340_v54  ;;  %v1616_v36 = vpop.permute.xlu1 %1615  ;;  %v2789_v54 = vld [vmem:[%s4051_s3 + $0x80] sm:$0xff] }
0x16a6   :  { %v1830_v38 = vpop.permute.xlu0 %1829  ;;  %v1620_v39 = vadd.f32 %v1616_v36, %v1408_v37  ;;  %v2795_v36 = vld [vmem:[%s4051_s3 + $0xb0] sm:$0xff]  ;;  %v2796_v37 = vld [vmem:[%s4051_s3 + $0xb8] sm:$0xff] }
0x16a7   :  { %3220 = vmatprep.subr.bf16.mxu0 %v3219_v33 }
0x16a8   :  { %v3419_v11 = vpop.eup %3418  ;;  %3222 = vmatpush3.bf16.msra.mxu0 %v3219_v33  ;;  %v1834_v43 = vadd.f32 %v1830_v38, %v1620_v39  ;;  %v2790_v33 = vld [vmem:[%s4051_s3 + $0x88] sm:$0xff]  ;;  %v3243_v38 = vpack.c.bf16 %v2796_v37, %v2795_v36 }
0x16a9   :  { %v3421_v12 = vpop.eup %3420  ;;  %v2159_v32 = vmul.f32 %v3419_v11, %v3415_v26  ;;  %v1828_v41 = vpop.permute.xlu1 %1827  ;;  %3224 = vmatprep.subr.bf16.mxu0 %v3223_v19  ;;  %v3231_v11 = vpack.c.bf16 %v2790_v33, %v2789_v54 }
0x16aa   :  { %v2158_v13 = vmul.f32 %v3421_v12, %v3417_v28  ;;  %v2038_v47 = vpop.permute.xlu0 %2037  ;;  %v1833_v51 = vadd.f32 %v1828_v41, %v1619_v46  ;;  %v2791_v12 = vld [vmem:[%s4051_s3 + $0x90] sm:$0xff] }
0x16ab   :  { %v2042_v52 = vadd.f32 %v2038_v47, %v1834_v43  ;;  %3232 = vmatprep.subr.bf16.mxu1 %v3231_v11 }
0x16ac   :  { %3048 = vmatprep.mubr.msk.f32.mxu0 %vm264_vm3, %v2158_v13  ;;  %3234 = vmatpush3.bf16.msra.mxu1 %v3231_v11  ;;  %v2792_v13 = vld [vmem:[%s4051_s3 + $0x98] sm:$0xff] }
0x16ad   :  { %3049 = vmatmul.mubr.msk.f32.vlgmr.msra.gmra.mrb[20].mxu0 %vm264_vm3, %v2159_v32  ;;  %v2036_v49 = vpop.permute.xlu1 %2035  ;;  %v3235_v32 = vpack.c.bf16 %v2792_v13, %v2791_v12 }
0x16ae   :  { %v2041_v53 = vadd.f32 %v2036_v49, %v1833_v51  ;;  %3226 = vmatpush3.bf16.msra.mxu0 %v3223_v19 }
0x16af   :  { %3228 = vmatprep.subr.bf16.mxu0 %v3227_v22  ;;  %3236 = vmatprep.subr.bf16.mxu1 %v3235_v32 }
0x16b0   :  { %3238 = vmatpush3.bf16.msra.mxu1 %v3235_v32 }
0x16b2   :  { %3230 = vmatpush3.bf16.msra.mxu0 %v3227_v22 }
0x1780   :  { %v3050_v31 = vpop.f32.mrb[20].mxu0 }
0x1781   :  { %2253 = vrot.lane.b32.xlu0 %v3050_v31, %s3471_s7  ;;  %v2240_v34 = vpop.f32.mrb[21].mxu0  ;;  %v2793_v31 = vld [vmem:[%s4051_s3 + $0xa0] sm:$0xff] }
0x1782   :  { %2251 = vrot.lane.b32.xlu1 %v2240_v34, %s3471_s7  ;;  %v2794_v34 = vld [vmem:[%s4051_s3 + $0xa8] sm:$0xff] }
0x1783   :  { %v3239_v35 = vpack.c.bf16 %v2794_v34, %v2793_v31 }
0x1785   :  { %3240 = vmatprep.subr.bf16.mxu1 %v3239_v35 }
0x1786   :  { %3242 = vmatpush3.bf16.msra.mxu1 %v3239_v35 }
0x1787   :  { %3244 = vmatprep.subr.bf16.mxu1 %v3243_v38 }
0x178a   :  { %3246 = vmatpush3.bf16.msra.mxu1 %v3243_v38 }
0x17f3   :  { %v2254_v62 = vpop.permute.xlu0 %2253 }
0x17f4   :  { %v2258_v63 = vadd.f32 %v2254_v62, %v2042_v52  ;;  %v2252_v0 = vpop.permute.xlu1 %2251 }
0x17f5   :  { %v2257_v2 = vadd.f32 %v2252_v0, %v2041_v53 }
0x17f6   :  { %2263 = vrot.lane.b32.xlu0 %v2258_v63, %s3471_s7 }
0x17f7   :  { %2261 = vrot.lane.b32.xlu1 %v2257_v2, %s3471_s7 }
0x1868   :  { %v2264_v4 = vpop.permute.xlu0 %2263 }
0x1869   :  { %v2268_v45 = vadd.f32 %v2264_v4, %v3795_v3  ;;  %v2262_v5 = vpop.permute.xlu1 %2261 }
0x186a   :  { %v2267_v10 = vadd.f32 %v2262_v5, %v3790_v60 }
0x186b   :  { %v2273_v6 = vsel %vm29_vm0, %v2268_v45, 0.0 }
0x186c   :  { %2274 = vadd.xlane.f32.xlu0 %v2273_v6  ;;  %v2270_v8 = vsel %vm29_vm0, %v2267_v10, 0.0 }
0x186d   :  { %2271 = vadd.xlane.f32.xlu1 %v2270_v8 }
0x187e   :  { %2299 = vrot.lane.b32.xlu1 %v2269_v42, %s3463_s27 }
0x18f9   :  { %v2275_v9 = vpop.xlane.xlu0 %2274 }
0x18fa   :  { %v2277_v15 = vmul.f32 0.03125, %v2275_v9  ;;  %v2272_v40 = vpop.xlane.xlu1 %2271 }
0x18fb   :  { %v2276_v18 = vmul.f32 0.03125, %v2272_v40 }
0x18fc   :  { %v2279_v3 = vsub.f32 %v2268_v45, %v2277_v15 }
0x18fd   :  { %v2278_v44 = vsub.f32 %v2267_v10, %v2276_v18  ;;  %v2419_v18 = vld [vmem:[%s4053_s5 + $0xc] ss:$0 sm:$0xff] }
0x18fe   :  { %v2281_v48 = vmul.f32 %v2279_v3, %v2279_v3  ;;  %v2300_v28 = vpop.permute.xlu1 %2299 }
0x18ff   :  { %v2280_v7 = vmul.f32 %v2278_v44, %v2278_v44 }
0x1900   :  { %v2285_v14 = vsel %vm29_vm0, %v2281_v48, 0.0 }
0x1901   :  { %v2282_v60 = vsel %vm29_vm0, %v2280_v7, 0.0 }
0x1902   :  { %2283 = vadd.xlane.f32.xlu0 %v2282_v60 }
0x1906   :  { %2286 = vadd.xlane.f32.xlu0 %v2285_v14 }
0x191c   :  { %2317 = vrot.lane.b32.xlu0 %v2269_v42, %s3471_s7 }
0x198f   :  { %v2284_v23 = vpop.xlane.xlu0 %2283 }
0x1990   :  { %v2288_v1 = vmul.f32 0.03125, %v2284_v23 }
0x1992   :  { %v2290_v24 = vadd.f32 1e-12, %v2288_v1 }
0x1993   :  { %v2287_v56 = vpop.xlane.xlu0 %2286 }
0x1994   :  { %3422 = vrsqrt.f32 %v2290_v24  ;;  %v2289_v57 = vmul.f32 0.03125, %v2287_v56 }
0x1996   :  { %v2291_v59 = vadd.f32 1e-12, %v2289_v57 }
0x1997   :  { %v2318_v39 = vpop.permute.xlu0 %2317 }
0x1998   :  { %3424 = vrsqrt.f32 %v2291_v59 }
0x199e   :  { %v3423_v25 = vpop.eup %3422 }
0x199f   :  { %v2294_v26 = vmul.f32 %v3423_v25, %v2278_v44  ;;  %v3473_v25 = vmov 0.0|0.0  }
0x19a0   :  { %3247 = vmatprep.subr.bf16.mxu0 %v3473_v25 }
0x19a1   :  { %v2296_v29 = vmul.f32 %v2294_v26, %v2269_v42  ;;  %v3438_v26 = vld [vmem:[%s4053_s5] ss:$0 sm:$0xff] }
0x19a2   :  { %v3425_v30 = vpop.eup %3424 }
0x19a3   :  { %v2295_v58 = vmul.f32 %v3425_v30, %v2279_v3  ;;  %v2302_v61 = vadd.f32 %v2300_v28, %v2296_v29  ;;  %v2546_v29 = vld [vmem:[%s4052_s4 + $0x18] sm:$0xff] }
0x19a5   :  { %v2297_v55 = vmul.f32 %v2295_v58, %v2269_v42  ;;  %3059 = vmatprep.mubr.msk.f32.mxu0 %vm29_vm0, %v2302_v61  ;;  %v2547_v58 = vld [vmem:[%s4052_s4 + $0x28] sm:$0xff] }
0x19a7   :  { %v2303_v50 = vadd.f32 %v2300_v28, %v2297_v55  ;;  %v2545_v28 = vld [vmem:[%s4052_s4 + $0x8] sm:$0xff] }
0x19a8   :  { %v3248_v30 = vpack.c.bf16 %v2546_v29, %v2545_v28 }
0x19a9   :  { %3060 = vmatmul.mubr.msk.f32.vlgmr.msra.gmra.mrb[22].mxu0 %vm29_vm0, %v2303_v50 }
0x19aa   :  { %3249 = vmatpush3.bf16.msra.mxu0 %v3248_v30  ;;  %3089 = vmatprep.mubr.msk.f32.mxu0 %vm3474_vm5, %v3464_v27 }
0x19ab   :  { %3250 = vmatprep.subr.bf16.mxu0 %v3473_v25 }
0x1a7c   :  { %v3061_v41 = vpop.f32.mrb[22].mxu0 }
0x1a7d   :  { %v2398_v43 = vadd.f32 %v3061_v41, %v2318_v39  ;;  %v2392_v46 = vpop.f32.mrb[23].mxu0 }
0x1a7e   :  { %v2393_v47 = vadd.f32 %v2392_v46, %v2318_v39 }
0x1a7f   :  { %v2402_v49 = vmul.f32 %v2398_v43, %v2398_v43 }
0x1a80   :  { %v2401_v51 = vmul.f32 %v2393_v47, %v2393_v47 }
0x1a81   :  { %v2404_v52 = vmul.f32 %v2402_v49, %v2398_v43  ;;  %v2626_v49 = vld [vmem:[%s4052_s4] sm:$0xff] }
0x1a82   :  { %v2403_v53 = vmul.f32 %v2401_v51, %v2393_v47  ;;  %v2627_v51 = vld [vmem:[%s4052_s4 + $0x10] sm:$0xff] }
0x1a83   :  { %v2406_v62 = vmul.f32 0.044715, %v2404_v52  ;;  %v2628_v52 = vld [vmem:[%s4052_s4 + $0x20] sm:$0xff] }
0x1a84   :  { %v2405_v63 = vmul.f32 0.044715, %v2403_v53  ;;  %v3254_v53 = vpack.c.bf16 %v2627_v51, %v2626_v49 }
0x1a85   :  { %v2408_v0 = vadd.f32 %v2406_v62, %v2398_v43  ;;  %v2629_v62 = vld [vmem:[%s4052_s4 + $0x30] sm:$0xff] }
0x1a86   :  { %v2407_v2 = vadd.f32 %v2405_v63, %v2393_v47  ;;  %v3257_v63 = vpack.c.bf16 %v2629_v62, %v2628_v52 }
0x1a87   :  { %v2410_v4 = vmul.f32 0.7978846, %v2408_v0 }
0x1a88   :  { %v2409_v45 = vmul.f32 0.7978846, %v2407_v2 }
0x1a89   :  { %3426 = vtanh.f32 %v2410_v4 }
0x1a8a   :  { %3428 = vtanh.f32 %v2409_v45 }
0x1a93   :  { %v3427_v5 = vpop.eup %3426 }
0x1a94   :  { %v3429_v10 = vpop.eup %3428  ;;  %v2414_v6 = vadd.f32 1.0, %v3427_v5  ;;  %v2630_v5 = vld [vmem:[%s4053_s5 + $0x8] ss:$0 sm:$0xff] }
0x1a95   :  { %v2413_v8 = vadd.f32 1.0, %v3429_v10 }
0x1a96   :  { %v2416_v42 = vmul.f32 0.5, %v2414_v6 }
0x1a97   :  { %v2415_v9 = vmul.f32 0.5, %v2413_v8 }
0x1a98   :  { %v2418_v40 = vmul.f32 %v2416_v42, %v2398_v43 }
0x1a99   :  { %v2417_v15 = vmul.f32 %v2415_v9, %v2393_v47 }
0x1a9b   :  { %3078 = vmatprep.mubr.msk.f32.mxu1 %vm1182_vm4, %v2417_v15 }
0x1a9c   :  { %3079 = vmatmul.mubr.msk.f32.vlgmr.msra.gmra.mrb[22].mxu1 %vm1182_vm4, %v2418_v40 }
0x1b6f   :  { %v3080_v3 = vpop.f32.mrb[22].mxu1 }
0x1b70   :  { %v2498_v44 = vadd.f32 %v3080_v3, %v2419_v18  ;;  %v2492_v7 = vpop.f32.mrb[23].mxu1 }
0x1b71   :  { %v2493_v60 = vadd.f32 %v2492_v7, %v2419_v18 }
0x1b72   :  { %v2502_v48 = vadd.f32 %v2498_v44, %v2303_v50 }
0x1b73   :  { %v2501_v14 = vadd.f32 %v2493_v60, %v2302_v61  ;;  %v2548_v61 = vld [vmem:[%s4052_s4 + $0x38] sm:$0xff]  ;;  %s3439_s4 = scalar_lea.vmem %s2712_s23, 32 }
0x1b74   :  { %v2506_v16 = vsel %vm29_vm0, %v2502_v48, 0.0  ;;  %v3251_v55 = vpack.c.bf16 %v2548_v61, %v2547_v58  ;;  %p3440_p0 = scmp.ne.s32.totalorder %s2712_s23, %s3439_s4  ;;  %p3445_p2 = scmp.lt.s32.totalorder %s3439_s4, %s3439_s4 }
0x1b75   :  { %2507 = vadd.xlane.f32.xlu1 %v2506_v16  ;;  %v2503_v17 = vsel %vm29_vm0, %v2501_v14, 0.0 }
0x1b76   :  { %2504 = vadd.xlane.f32.xlu0 %v2503_v17  ;;  %3252 = vmatpush3.bf16.msra.mxu0 %v3251_v55  ;;  %p3446_p3 = por %p3445_p2, %p3444_p1 }
0x1b77   :  { %3253 = vmatprep.subr.bf16.mxu0 %v3473_v25 }
0x1b78   :  { %p3447_p4 = pnand %p3446_p3, %p3440_p0 }
0x1c02   :  { %v2508_v19 = vpop.xlane.xlu1 %2507 }
0x1c03   :  { %v2510_v20 = vmul.f32 0.03125, %v2508_v19  ;;  %v2505_v21 = vpop.xlane.xlu0 %2504 }
0x1c04   :  { %v2509_v22 = vmul.f32 0.03125, %v2505_v21 }
0x1c05   :  { %v2512_v23 = vsub.f32 %v2502_v48, %v2510_v20 }
0x1c06   :  { %v2511_v1 = vsub.f32 %v2501_v14, %v2509_v22 }
0x1c07   :  { %v2514_v24 = vmul.f32 %v2512_v23, %v2512_v23 }
0x1c08   :  { %v2513_v56 = vmul.f32 %v2511_v1, %v2511_v1 }
0x1c09   :  { %v2518_v57 = vsel %vm29_vm0, %v2514_v24, 0.0 }
0x1c0a   :  { %2519 = vadd.xlane.f32.xlu1 %v2518_v57  ;;  %v2515_v59 = vsel %vm29_vm0, %v2513_v56, 0.0 }
0x1c0b   :  { %2516 = vadd.xlane.f32.xlu0 %v2515_v59 }
0x1c1b   :  { %2530 = vrot.lane.b32.xlu1 %v2419_v18, %s3463_s27 }
0x1c1f   :  { %2549 = vrot.lane.b32.xlu1 %v3438_v26, %s3471_s7 }
0x1c21   :  { %2535 = vrot.lane.b32.xlu0 %v2419_v18, %s3471_s7 }
0x1c97   :  { %v2520_v50 = vpop.xlane.xlu1 %2519 }
0x1c98   :  { %v2522_v54 = vmul.f32 0.03125, %v2520_v50  ;;  %v2517_v33 = vpop.xlane.xlu0 %2516 }
0x1c99   :  { %v2521_v11 = vmul.f32 0.03125, %v2517_v33 }
0x1c9a   :  { %v2524_v12 = vadd.f32 1e-12, %v2522_v54 }
0x1c9b   :  { %v2523_v13 = vadd.f32 1e-12, %v2521_v11  ;;  %v2531_v31 = vpop.permute.xlu1 %2530 }
0x1c9c   :  { %3430 = vrsqrt.f32 %v2524_v12  ;;  %v2536_v37 = vpop.permute.xlu0 %2535 }
0x1c9d   :  { %3432 = vrsqrt.f32 %v2523_v13 }
0x1ca6   :  { %v3431_v32 = vpop.eup %3430 }
0x1ca7   :  { %v3433_v34 = vpop.eup %3432  ;;  %v2528_v35 = vmul.f32 %v3431_v32, %v2512_v23 }
0x1ca8   :  { %v2527_v36 = vmul.f32 %v3433_v34, %v2511_v1 }
0x1ca9   :  { %v2534_v38 = vmul.f32 %v2531_v31, %v2528_v35 }
0x1caa   :  { %v2533_v39 = vmul.f32 %v2531_v31, %v2527_v36 }
0x1cab   :  { %v2539_v41 = vadd.f32 %v2536_v37, %v2534_v38 }
0x1cac   :  { %v2538_v43 = vadd.f32 %v2536_v37, %v2533_v39 }
0x1cad   :  { %v2541_v46 = vrot.slane %v2539_v41, 7 }
0x1caf   :  { %v2544_v47 = vsel %vm2543_vm6, %v2538_v43, %v2541_v46 }
0x1cb0   :  { %3090 = vmatmul.mubr.msk.f32.vlgmr.msra.gmra.mrb[24].mxu0 %vm29_vm0, %v2544_v47 }
0x1cb1   :  { %3100 = vmatprep.mubr.msk.f32.mxu0 %vm3474_vm5, %v3464_v27  ;;  %3255 = vmatpush3.bf16.msra.mxu0 %v3254_v53  ;;  %v2550_v27 = vpop.permute.xlu1 %2549 }
0x1cb2   :  { %3256 = vmatprep.subr.bf16.mxu0 %v3473_v25 }
0x1cb5   :  { %3258 = vmatpush3.bf16.msra.mxu0 %v3257_v63 }
0x1d83   :  { %v2621_v0 = vpop.f32.mrb[24].mxu0 }
0x1d84   :  { %v2622_v2 = vadd.f32 %v2621_v0, %v2550_v27  ;;  %v3091_v4 = vpop.f32.mrb[25].mxu0 }
0x1d86   :  { %3434 = vtanh.f32 %v2622_v2 }
0x1d90   :  { %v3435_v45 = vpop.eup %3434 }
0x1d91   :  { %3101 = vmatmul.mubr.msk.f32.vlgmr.msra.gmra.mrb[26].mxu0 %vm29_vm0, %v3435_v45 }
0x1e64   :  { %v2700_v10 = vpop.f32.mrb[26].mxu0 }
0x1e65   :  { %v2701_v6 = vadd.f32 %v2700_v10, %v2630_v5  ;;  %v3102_v8 = vpop.f32.mrb[27].mxu0 }
0x1e67   :  { %2704 = vst [vmem:[#allocation2] sm:$0x3] %v2701_v6 }
0x1e68   :  { %3450 = shalt.err (!%p3447_p4)
}
0x1e69   :  { %s3451_s29 = scalar_lea.hbm %s4054_s6, 32 }
0x1e6a   :  { %p3452_p5 = scmp.ne.s32.totalorder %s4054_s6, %s3451_s29  ;;  %p3455_p6 = scmp.lt.u32.totalorder %s3451_s29, %s4054_s6 }
0x1e6c   :  { %p3457_p7 = pnand %p3455_p6, %p3452_p5 }
0x1e6e   :  { %3460 = shalt.err (!%p3457_p7)
}
0x1e6f   :  { %2714 = dma.vmem_to_hbm [thread:$0]  %s2712_s23, 32, %s4054_s6, [#allocation3]  }
0x1e70   :  { %3461 = dma.done.wait [#allocation3], 32  }
0x1e71   :  { %3462 = vsyncadd [#allocation3], 4294967264 }
0x1e72   :  { %2718 = vsyncpa [#allocation3], 1 }

</bundles_post_ra>
